<compile_context>
chip_gen: v7x
topology: tpu7x:2x2x1
jax: 0.10.0
libtpu: 0.0.40
codegen_flags: <defaults>
</compile_context>

<pallas_src>
import jax
import jax.numpy as jnp
from jax.experimental import pallas as pl
from jax.experimental.pallas import tpu as pltpu


# ------------------------------ fused kernel -------------------------------

def make_fused_kernel(H, W, C, HID, K):
    HW = H * W
    MEAN = 0.5      # forward() hard-codes mean = std = 0.5 per channel,
    STD = 0.5       # so they are baked as constants (review: avoid vector
    INV_STD = 2.0   # divide + broadcast-row inputs).

    def kernel(x_ref, w1_ref, b1_ref, w2_ref, b2_ref, wtT_ref, bt_ref, o_ref):
        # x_ref: (1, H+2, W+2, C) raw image tile for ONE sample, halo padded
        # with the mean value, so normalizing maps the halo to exactly 0.
        xp = x_ref[0]                                  # (H+2, W+2, C)
        xn = (xp - MEAN) * INV_STD                     # fused normalize

        # ---- 3x3 'same' conv + ReLU: im2col in VMEM as 9 shifted dots ----
        # TODO(synk): the real SCSEUnet(senet154) + loaded .pth checkpoint has
        # no in-script equivalent; a small 3x3 conv -> ReLU -> 1x1 conv -> tanh
        # segmentation head (3 output channels) stands in.
        acc = jnp.zeros((HW, HID), jnp.float32)
        for t in range(9):
            di, dj = t // 3, t % 3
            win = xn[di:di + H, dj:dj + W, :].reshape(HW, C)   # (HW, C) window
            acc = acc + jnp.dot(win, w1_ref[t],
                                preferred_element_type=jnp.float32)
        h1 = jnp.maximum(acc + b1_ref[...], 0.0)                # (HW, HID)

        # ---- 1x1 conv + tanh, then denorm + clamp (all fused, in VMEM) ----
        x1 = jnp.tanh(jnp.dot(h1, w2_ref[...],
                              preferred_element_type=jnp.float32)
                      + b2_ref[...])                            # (HW, C)
        x3 = jnp.clip(x1 * STD + MEAN, 0.0, 1.0)                # (HW, C)

        # ---- linear classifier, fused into the same call ----
        # TODO(synk): target_model is an arbitrary external classifier; a
        # single linear layer on the flattened clamped image stands in.
        # logits[k] = sum_c sum_p wtT[c, k, p] * x3[p, c]
        logit = bt_ref[...]                                     # (K, 1)
        for c in range(C):
            m = jnp.dot(wtT_ref[c], x3,
                        preferred_element_type=jnp.float32)     # (K, C)
            logit = logit + m[:, c:c + 1]
        o_ref[0] = logit                                        # (K, 1)

    return kernel


# ------------------------------- parameters --------------------------------

def make_params(hidden=32, num_classes=10, c=3, h=16, w=16):
    key = jax.random.PRNGKey(0)
    k1, k2, k3 = jax.random.split(key, 3)
    hw = h * w
    # surrogate "UNet": per-tap 3x3 conv weights (9, C, hidden) + 1x1 conv
    w1 = 0.1 * jax.random.normal(k1, (9, c, hidden), jnp.float32)
    b1 = jnp.zeros((1, hidden), jnp.float32)
    w2 = 0.1 * jax.random.normal(k2, (hidden, c), jnp.float32)
    b2 = jnp.zeros((1, c), jnp.float32)
    # surrogate target_model: linear head on the CHW-flattened clamped image.
    wt = 0.05 * jax.random.normal(k3, (c * hw, num_classes), jnp.float32)
    bt = jnp.zeros((num_classes, 1), jnp.float32)
    # Permute the classifier weight ONCE at param time so the kernel consumes
    # the NHWC-resident x3 directly (no in/out transposes between kernels):
    #   wtT[c, k, p] = wt[c*hw + p, k]
    wtT = jnp.transpose(wt.reshape(c, hw, num_classes), (0, 2, 1))  # (C, K, HW)
    return {"w1": w1, "b1": b1, "w2": w2, "b2": b2, "wtT": wtT, "btT": bt}


# ------------------------------ forward pass --------------------------------

@jax.jit
def osn_net_forward(x, params):
    """x: [N, 3, H, W] float32 NCHW (PyTorch convention). Returns [N, K]."""
    N, C, H, W = x.shape
    HID = params["w1"].shape[2]
    K = params["wtT"].shape[1]

    # Only host-side layout prep: one transpose of the NCHW module input to
    # NHWC and a 1-pixel halo pad with the mean value (so the in-kernel
    # normalize turns the halo into exact zeros, matching zero-padded conv on
    # the normalized image).  ~1.27x data, vs the old 9x im2col expansion.
    x_nhwc = jnp.transpose(x, (0, 2, 3, 1))
    x_pad = jnp.pad(x_nhwc, ((0, 0), (1, 1), (1, 1), (0, 0)),
                    constant_values=0.5)

    kernel = make_fused_kernel(H, W, C, HID, K)
    out = pl.pallas_call(
        kernel,
        out_shape=jax.ShapeDtypeStruct((N, K, 1), jnp.float32),
        grid=(N,),                                   # one sample per grid step
        in_specs=[
            pl.BlockSpec((1, H + 2, W + 2, C), lambda n: (n, 0, 0, 0)),
            pl.BlockSpec((9, C, HID), lambda n: (0, 0, 0)),
            pl.BlockSpec((1, HID), lambda n: (0, 0)),
            pl.BlockSpec((HID, C), lambda n: (0, 0)),
            pl.BlockSpec((1, C), lambda n: (0, 0)),
            pl.BlockSpec((C, K, H * W), lambda n: (0, 0, 0)),
            pl.BlockSpec((K, 1), lambda n: (0, 0)),
        ],
        out_specs=pl.BlockSpec((1, K, 1), lambda n: (n, 0, 0)),
        compiler_params=pltpu.CompilerParams(
            dimension_semantics=("parallel",)),      # shard samples across TCs
    )(x_pad, params["w1"], params["b1"], params["w2"], params["b2"],
      params["wtT"], params["btT"])

    return out[:, :, 0]                              # (N, K)


if __name__ == "__main__":
    key = jax.random.PRNGKey(0)
    N, C, H, W = 2, 3, 16, 16
    x = jax.random.uniform(key, (N, C, H, W), jnp.float32)   # image in [0, 1]
    params = make_params(hidden=32, num_classes=10, c=C, h=H, w=W)

    out = osn_net_forward(x, params)
    jax.block_until_ready(out)
    assert out.shape == (N, 10) and out.dtype == jnp.float32
    print("KERNEL_OK")
</pallas_src>

<mosaic_0001>
module attributes {stable_mosaic.version = 11 : i64} {
  func.func @kernel(%arg0: i32, %arg1: memref<1x18x18x3xf32, #tpu.memory_space<vmem>>, %arg2: memref<9x3x32xf32, #tpu.memory_space<vmem>>, %arg3: memref<1x32xf32, #tpu.memory_space<vmem>>, %arg4: memref<32x3xf32, #tpu.memory_space<vmem>>, %arg5: memref<1x3xf32, #tpu.memory_space<vmem>>, %arg6: memref<3x10x256xf32, #tpu.memory_space<vmem>>, %arg7: memref<10x1xf32, #tpu.memory_space<vmem>>, %arg8: memref<1x10x1xf32, #tpu.memory_space<vmem>>) attributes {dimension_semantics = [#tpu.dimension_semantics<parallel>], iteration_bounds = array<i64: 2>, scalar_prefetch = 0 : i64, scratch_operands = 0 : i64, tpu.core_type = #tpu.core_type<tc>, window_params = [{transform_indices = @transform_0, window_bounds = array<i64: 1, 18, 18, 3>}, {pipeline_mode = #tpu.pipeline_mode<synchronous>, transform_indices = @transform_1, window_bounds = array<i64: 9, 3, 32>}, {pipeline_mode = #tpu.pipeline_mode<synchronous>, transform_indices = @transform_2, window_bounds = array<i64: 1, 32>}, {pipeline_mode = #tpu.pipeline_mode<synchronous>, transform_indices = @transform_3, window_bounds = array<i64: 32, 3>}, {pipeline_mode = #tpu.pipeline_mode<synchronous>, transform_indices = @transform_4, window_bounds = array<i64: 1, 3>}, {pipeline_mode = #tpu.pipeline_mode<synchronous>, transform_indices = @transform_5, window_bounds = array<i64: 3, 10, 256>}, {pipeline_mode = #tpu.pipeline_mode<synchronous>, transform_indices = @transform_6, window_bounds = array<i64: 10, 1>}, {transform_indices = @transform_7, window_bounds = array<i64: 1, 10, 1>}]} {
    %c0 = arith.constant 0 : index
    %c0_0 = arith.constant 0 : index
    %c0_1 = arith.constant 0 : index
    %c0_2 = arith.constant 0 : index
    %0 = vector.load %arg1[%c0, %c0_0, %c0_1, %c0_2] : memref<1x18x18x3xf32, #tpu.memory_space<vmem>>, vector<1x18x18x3xf32>
    %1 = vector.shape_cast %0 : vector<1x18x18x3xf32> to vector<18x18x3xf32>
    %cst = arith.constant 5.000000e-01 : f32
    %2 = vector.broadcast %cst : f32 to vector<18x18x3xf32>
    %3 = arith.subf %1, %2 : vector<18x18x3xf32>
    %cst_3 = arith.constant 2.000000e+00 : f32
    %4 = vector.broadcast %cst_3 : f32 to vector<18x18x3xf32>
    %5 = arith.mulf %3, %4 : vector<18x18x3xf32>
    %cst_4 = arith.constant 0.000000e+00 : f32
    %6 = vector.broadcast %cst_4 : f32 to vector<256x32xf32>
    %7 = vector.extract_strided_slice %5 {offsets = [0, 0, 0], sizes = [16, 16, 3], strides = [1, 1, 1]} : vector<18x18x3xf32> to vector<16x16x3xf32>
    %8 = vector.shape_cast %7 : vector<16x16x3xf32> to vector<256x3xf32>
    %c0_5 = arith.constant 0 : index
    %c0_6 = arith.constant 0 : index
    %c0_7 = arith.constant 0 : index
    %9 = vector.load %arg2[%c0_5, %c0_6, %c0_7] : memref<9x3x32xf32, #tpu.memory_space<vmem>>, vector<1x3x32xf32>
    %10 = vector.shape_cast %9 : vector<1x3x32xf32> to vector<3x32xf32>
    %cst_8 = arith.constant dense<0.000000e+00> : vector<256x32xf32>
    %11 = tpu.matmul %8, %10, %cst_8 {dimension_numbers = #tpu.dot_dimension_numbers<[1], [0], [0], [1], [0, 0, 1, 1], [], []>} : vector<256x3xf32>, vector<3x32xf32>, vector<256x32xf32> -> vector<256x32xf32>
    %12 = arith.addf %6, %11 : vector<256x32xf32>
    %13 = vector.extract_strided_slice %5 {offsets = [0, 1, 0], sizes = [16, 16, 3], strides = [1, 1, 1]} : vector<18x18x3xf32> to vector<16x16x3xf32>
    %14 = vector.shape_cast %13 : vector<16x16x3xf32> to vector<256x3xf32>
    %c1 = arith.constant 1 : index
    %c0_9 = arith.constant 0 : index
    %c0_10 = arith.constant 0 : index
    %15 = vector.load %arg2[%c1, %c0_9, %c0_10] : memref<9x3x32xf32, #tpu.memory_space<vmem>>, vector<1x3x32xf32>
    %16 = vector.shape_cast %15 : vector<1x3x32xf32> to vector<3x32xf32>
    %cst_11 = arith.constant dense<0.000000e+00> : vector<256x32xf32>
    %17 = tpu.matmul %14, %16, %cst_11 {dimension_numbers = #tpu.dot_dimension_numbers<[1], [0], [0], [1], [0, 0, 1, 1], [], []>} : vector<256x3xf32>, vector<3x32xf32>, vector<256x32xf32> -> vector<256x32xf32>
    %18 = arith.addf %12, %17 : vector<256x32xf32>
    %19 = vector.extract_strided_slice %5 {offsets = [0, 2, 0], sizes = [16, 16, 3], strides = [1, 1, 1]} : vector<18x18x3xf32> to vector<16x16x3xf32>
    %20 = vector.shape_cast %19 : vector<16x16x3xf32> to vector<256x3xf32>
    %c2 = arith.constant 2 : index
    %c0_12 = arith.constant 0 : index
    %c0_13 = arith.constant 0 : index
    %21 = vector.load %arg2[%c2, %c0_12, %c0_13] : memref<9x3x32xf32, #tpu.memory_space<vmem>>, vector<1x3x32xf32>
    %22 = vector.shape_cast %21 : vector<1x3x32xf32> to vector<3x32xf32>
    %cst_14 = arith.constant dense<0.000000e+00> : vector<256x32xf32>
    %23 = tpu.matmul %20, %22, %cst_14 {dimension_numbers = #tpu.dot_dimension_numbers<[1], [0], [0], [1], [0, 0, 1, 1], [], []>} : vector<256x3xf32>, vector<3x32xf32>, vector<256x32xf32> -> vector<256x32xf32>
    %24 = arith.addf %18, %23 : vector<256x32xf32>
    %25 = vector.extract_strided_slice %5 {offsets = [1, 0, 0], sizes = [16, 16, 3], strides = [1, 1, 1]} : vector<18x18x3xf32> to vector<16x16x3xf32>
    %26 = vector.shape_cast %25 : vector<16x16x3xf32> to vector<256x3xf32>
    %c3 = arith.constant 3 : index
    %c0_15 = arith.constant 0 : index
    %c0_16 = arith.constant 0 : index
    %27 = vector.load %arg2[%c3, %c0_15, %c0_16] : memref<9x3x32xf32, #tpu.memory_space<vmem>>, vector<1x3x32xf32>
    %28 = vector.shape_cast %27 : vector<1x3x32xf32> to vector<3x32xf32>
    %cst_17 = arith.constant dense<0.000000e+00> : vector<256x32xf32>
    %29 = tpu.matmul %26, %28, %cst_17 {dimension_numbers = #tpu.dot_dimension_numbers<[1], [0], [0], [1], [0, 0, 1, 1], [], []>} : vector<256x3xf32>, vector<3x32xf32>, vector<256x32xf32> -> vector<256x32xf32>
    %30 = arith.addf %24, %29 : vector<256x32xf32>
    %31 = vector.extract_strided_slice %5 {offsets = [1, 1, 0], sizes = [16, 16, 3], strides = [1, 1, 1]} : vector<18x18x3xf32> to vector<16x16x3xf32>
    %32 = vector.shape_cast %31 : vector<16x16x3xf32> to vector<256x3xf32>
    %c4 = arith.constant 4 : index
    %c0_18 = arith.constant 0 : index
    %c0_19 = arith.constant 0 : index
    %33 = vector.load %arg2[%c4, %c0_18, %c0_19] : memref<9x3x32xf32, #tpu.memory_space<vmem>>, vector<1x3x32xf32>
    %34 = vector.shape_cast %33 : vector<1x3x32xf32> to vector<3x32xf32>
    %cst_20 = arith.constant dense<0.000000e+00> : vector<256x32xf32>
    %35 = tpu.matmul %32, %34, %cst_20 {dimension_numbers = #tpu.dot_dimension_numbers<[1], [0], [0], [1], [0, 0, 1, 1], [], []>} : vector<256x3xf32>, vector<3x32xf32>, vector<256x32xf32> -> vector<256x32xf32>
    %36 = arith.addf %30, %35 : vector<256x32xf32>
    %37 = vector.extract_strided_slice %5 {offsets = [1, 2, 0], sizes = [16, 16, 3], strides = [1, 1, 1]} : vector<18x18x3xf32> to vector<16x16x3xf32>
    %38 = vector.shape_cast %37 : vector<16x16x3xf32> to vector<256x3xf32>
    %c5 = arith.constant 5 : index
    %c0_21 = arith.constant 0 : index
    %c0_22 = arith.constant 0 : index
    %39 = vector.load %arg2[%c5, %c0_21, %c0_22] : memref<9x3x32xf32, #tpu.memory_space<vmem>>, vector<1x3x32xf32>
    %40 = vector.shape_cast %39 : vector<1x3x32xf32> to vector<3x32xf32>
    %cst_23 = arith.constant dense<0.000000e+00> : vector<256x32xf32>
    %41 = tpu.matmul %38, %40, %cst_23 {dimension_numbers = #tpu.dot_dimension_numbers<[1], [0], [0], [1], [0, 0, 1, 1], [], []>} : vector<256x3xf32>, vector<3x32xf32>, vector<256x32xf32> -> vector<256x32xf32>
    %42 = arith.addf %36, %41 : vector<256x32xf32>
    %43 = vector.extract_strided_slice %5 {offsets = [2, 0, 0], sizes = [16, 16, 3], strides = [1, 1, 1]} : vector<18x18x3xf32> to vector<16x16x3xf32>
    %44 = vector.shape_cast %43 : vector<16x16x3xf32> to vector<256x3xf32>
    %c6 = arith.constant 6 : index
    %c0_24 = arith.constant 0 : index
    %c0_25 = arith.constant 0 : index
    %45 = vector.load %arg2[%c6, %c0_24, %c0_25] : memref<9x3x32xf32, #tpu.memory_space<vmem>>, vector<1x3x32xf32>
    %46 = vector.shape_cast %45 : vector<1x3x32xf32> to vector<3x32xf32>
    %cst_26 = arith.constant dense<0.000000e+00> : vector<256x32xf32>
    %47 = tpu.matmul %44, %46, %cst_26 {dimension_numbers = #tpu.dot_dimension_numbers<[1], [0], [0], [1], [0, 0, 1, 1], [], []>} : vector<256x3xf32>, vector<3x32xf32>, vector<256x32xf32> -> vector<256x32xf32>
    %48 = arith.addf %42, %47 : vector<256x32xf32>
    %49 = vector.extract_strided_slice %5 {offsets = [2, 1, 0], sizes = [16, 16, 3], strides = [1, 1, 1]} : vector<18x18x3xf32> to vector<16x16x3xf32>
    %50 = vector.shape_cast %49 : vector<16x16x3xf32> to vector<256x3xf32>
    %c7 = arith.constant 7 : index
    %c0_27 = arith.constant 0 : index
    %c0_28 = arith.constant 0 : index
    %51 = vector.load %arg2[%c7, %c0_27, %c0_28] : memref<9x3x32xf32, #tpu.memory_space<vmem>>, vector<1x3x32xf32>
    %52 = vector.shape_cast %51 : vector<1x3x32xf32> to vector<3x32xf32>
    %cst_29 = arith.constant dense<0.000000e+00> : vector<256x32xf32>
    %53 = tpu.matmul %50, %52, %cst_29 {dimension_numbers = #tpu.dot_dimension_numbers<[1], [0], [0], [1], [0, 0, 1, 1], [], []>} : vector<256x3xf32>, vector<3x32xf32>, vector<256x32xf32> -> vector<256x32xf32>
    %54 = arith.addf %48, %53 : vector<256x32xf32>
    %55 = vector.extract_strided_slice %5 {offsets = [2, 2, 0], sizes = [16, 16, 3], strides = [1, 1, 1]} : vector<18x18x3xf32> to vector<16x16x3xf32>
    %56 = vector.shape_cast %55 : vector<16x16x3xf32> to vector<256x3xf32>
    %c8 = arith.constant 8 : index
    %c0_30 = arith.constant 0 : index
    %c0_31 = arith.constant 0 : index
    %57 = vector.load %arg2[%c8, %c0_30, %c0_31] : memref<9x3x32xf32, #tpu.memory_space<vmem>>, vector<1x3x32xf32>
    %58 = vector.shape_cast %57 : vector<1x3x32xf32> to vector<3x32xf32>
    %cst_32 = arith.constant dense<0.000000e+00> : vector<256x32xf32>
    %59 = tpu.matmul %56, %58, %cst_32 {dimension_numbers = #tpu.dot_dimension_numbers<[1], [0], [0], [1], [0, 0, 1, 1], [], []>} : vector<256x3xf32>, vector<3x32xf32>, vector<256x32xf32> -> vector<256x32xf32>
    %60 = arith.addf %54, %59 : vector<256x32xf32>
    %c0_33 = arith.constant 0 : index
    %c0_34 = arith.constant 0 : index
    %61 = vector.load %arg3[%c0_33, %c0_34] : memref<1x32xf32, #tpu.memory_space<vmem>>, vector<1x32xf32>
    %62 = vector.broadcast %61 : vector<1x32xf32> to vector<256x32xf32>
    %63 = arith.addf %60, %62 : vector<256x32xf32>
    %cst_35 = arith.constant 0.000000e+00 : f32
    %64 = vector.broadcast %cst_35 : f32 to vector<256x32xf32>
    %65 = arith.maximumf %63, %64 : vector<256x32xf32>
    %c0_36 = arith.constant 0 : index
    %c0_37 = arith.constant 0 : index
    %66 = vector.load %arg4[%c0_36, %c0_37] : memref<32x3xf32, #tpu.memory_space<vmem>>, vector<32x3xf32>
    %cst_38 = arith.constant dense<0.000000e+00> : vector<256x3xf32>
    %67 = tpu.matmul %65, %66, %cst_38 {dimension_numbers = #tpu.dot_dimension_numbers<[1], [0], [0], [1], [0, 0, 1, 1], [], []>} : vector<256x32xf32>, vector<32x3xf32>, vector<256x3xf32> -> vector<256x3xf32>
    %c0_39 = arith.constant 0 : index
    %c0_40 = arith.constant 0 : index
    %68 = vector.load %arg5[%c0_39, %c0_40] : memref<1x3xf32, #tpu.memory_space<vmem>>, vector<1x3xf32>
    %69 = vector.broadcast %68 : vector<1x3xf32> to vector<256x3xf32>
    %70 = arith.addf %67, %69 : vector<256x3xf32>
    %71 = math.tanh %70 : vector<256x3xf32>
    %cst_41 = arith.constant 5.000000e-01 : f32
    %72 = vector.broadcast %cst_41 : f32 to vector<256x3xf32>
    %73 = arith.mulf %71, %72 : vector<256x3xf32>
    %cst_42 = arith.constant 5.000000e-01 : f32
    %74 = vector.broadcast %cst_42 : f32 to vector<256x3xf32>
    %75 = arith.addf %73, %74 : vector<256x3xf32>
    %cst_43 = arith.constant 0.000000e+00 : f32
    %cst_44 = arith.constant 1.000000e+00 : f32
    %76 = vector.broadcast %cst_43 : f32 to vector<256x3xf32>
    %77 = arith.maximumf %76, %75 : vector<256x3xf32>
    %78 = vector.broadcast %cst_44 : f32 to vector<256x3xf32>
    %79 = arith.minimumf %78, %77 : vector<256x3xf32>
    %c0_45 = arith.constant 0 : index
    %c0_46 = arith.constant 0 : index
    %80 = vector.load %arg7[%c0_45, %c0_46] : memref<10x1xf32, #tpu.memory_space<vmem>>, vector<10x1xf32>
    %c0_47 = arith.constant 0 : index
    %c0_48 = arith.constant 0 : index
    %c0_49 = arith.constant 0 : index
    %81 = vector.load %arg6[%c0_47, %c0_48, %c0_49] : memref<3x10x256xf32, #tpu.memory_space<vmem>>, vector<1x10x256xf32>
    %82 = vector.shape_cast %81 : vector<1x10x256xf32> to vector<10x256xf32>
    %cst_50 = arith.constant dense<0.000000e+00> : vector<10x3xf32>
    %83 = tpu.matmul %82, %79, %cst_50 {dimension_numbers = #tpu.dot_dimension_numbers<[1], [0], [0], [1], [0, 0, 1, 1], [], []>} : vector<10x256xf32>, vector<256x3xf32>, vector<10x3xf32> -> vector<10x3xf32>
    %84 = vector.extract_strided_slice %83 {offsets = [0, 0], sizes = [10, 1], strides = [1, 1]} : vector<10x3xf32> to vector<10x1xf32>
    %85 = arith.addf %80, %84 : vector<10x1xf32>
    %c1_51 = arith.constant 1 : index
    %c0_52 = arith.constant 0 : index
    %c0_53 = arith.constant 0 : index
    %86 = vector.load %arg6[%c1_51, %c0_52, %c0_53] : memref<3x10x256xf32, #tpu.memory_space<vmem>>, vector<1x10x256xf32>
    %87 = vector.shape_cast %86 : vector<1x10x256xf32> to vector<10x256xf32>
    %cst_54 = arith.constant dense<0.000000e+00> : vector<10x3xf32>
    %88 = tpu.matmul %87, %79, %cst_54 {dimension_numbers = #tpu.dot_dimension_numbers<[1], [0], [0], [1], [0, 0, 1, 1], [], []>} : vector<10x256xf32>, vector<256x3xf32>, vector<10x3xf32> -> vector<10x3xf32>
    %89 = vector.extract_strided_slice %88 {offsets = [0, 1], sizes = [10, 1], strides = [1, 1]} : vector<10x3xf32> to vector<10x1xf32>
    %90 = arith.addf %85, %89 : vector<10x1xf32>
    %c2_55 = arith.constant 2 : index
    %c0_56 = arith.constant 0 : index
    %c0_57 = arith.constant 0 : index
    %91 = vector.load %arg6[%c2_55, %c0_56, %c0_57] : memref<3x10x256xf32, #tpu.memory_space<vmem>>, vector<1x10x256xf32>
    %92 = vector.shape_cast %91 : vector<1x10x256xf32> to vector<10x256xf32>
    %cst_58 = arith.constant dense<0.000000e+00> : vector<10x3xf32>
    %93 = tpu.matmul %92, %79, %cst_58 {dimension_numbers = #tpu.dot_dimension_numbers<[1], [0], [0], [1], [0, 0, 1, 1], [], []>} : vector<10x256xf32>, vector<256x3xf32>, vector<10x3xf32> -> vector<10x3xf32>
    %94 = vector.extract_strided_slice %93 {offsets = [0, 2], sizes = [10, 1], strides = [1, 1]} : vector<10x3xf32> to vector<10x1xf32>
    %95 = arith.addf %90, %94 : vector<10x1xf32>
    %c0_59 = arith.constant 0 : index
    %c0_60 = arith.constant 0 : index
    %c0_61 = arith.constant 0 : index
    %96 = vector.load %arg8[%c0_59, %c0_60, %c0_61] : memref<1x10x1xf32, #tpu.memory_space<vmem>>, vector<1x10x1xf32>
    %97 = vector.shape_cast %96 : vector<1x10x1xf32> to vector<10x1xf32>
    %98 = vector.shape_cast %95 : vector<10x1xf32> to vector<1x10x1xf32>
    tpu.vector_store %arg8[%c0_59, %c0_60, %c0_61], %98 {strides = array<i32>} : memref<1x10x1xf32, #tpu.memory_space<vmem>>, vector<1x10x1xf32>,
    return
  }
  func.func @transform_0(%arg0: i32) -> (i32, i32, i32, i32) {
    %c0_i32 = arith.constant 0 : i32
    %c0_i32_0 = arith.constant 0 : i32
    %c0_i32_1 = arith.constant 0 : i32
    %c0_i32_2 = arith.constant 0 : i32
    return %arg0, %c0_i32, %c0_i32_0, %c0_i32_1 : i32, i32, i32, i32
  }
  func.func @transform_1(%arg0: i32) -> (i32, i32, i32) {
    %c0_i32 = arith.constant 0 : i32
    %c0_i32_0 = arith.constant 0 : i32
    %c0_i32_1 = arith.constant 0 : i32
    %c0_i32_2 = arith.constant 0 : i32
    return %c0_i32, %c0_i32_0, %c0_i32_1 : i32, i32, i32
  }
  func.func @transform_2(%arg0: i32) -> (i32, i32) {
    %c0_i32 = arith.constant 0 : i32
    %c0_i32_0 = arith.constant 0 : i32
    %c0_i32_1 = arith.constant 0 : i32
    return %c0_i32, %c0_i32_0 : i32, i32
  }
  func.func @transform_3(%arg0: i32) -> (i32, i32) {
    %c0_i32 = arith.constant 0 : i32
    %c0_i32_0 = arith.constant 0 : i32
    %c0_i32_1 = arith.constant 0 : i32
    return %c0_i32, %c0_i32_0 : i32, i32
  }
  func.func @transform_4(%arg0: i32) -> (i32, i32) {
    %c0_i32 = arith.constant 0 : i32
    %c0_i32_0 = arith.constant 0 : i32
    %c0_i32_1 = arith.constant 0 : i32
    return %c0_i32, %c0_i32_0 : i32, i32
  }
  func.func @transform_5(%arg0: i32) -> (i32, i32, i32) {
    %c0_i32 = arith.constant 0 : i32
    %c0_i32_0 = arith.constant 0 : i32
    %c0_i32_1 = arith.constant 0 : i32
    %c0_i32_2 = arith.constant 0 : i32
    return %c0_i32, %c0_i32_0, %c0_i32_1 : i32, i32, i32
  }
  func.func @transform_6(%arg0: i32) -> (i32, i32) {
    %c0_i32 = arith.constant 0 : i32
    %c0_i32_0 = arith.constant 0 : i32
    %c0_i32_1 = arith.constant 0 : i32
    return %c0_i32, %c0_i32_0 : i32, i32
  }
  func.func @transform_7(%arg0: i32) -> (i32, i32, i32) {
    %c0_i32 = arith.constant 0 : i32
    %c0_i32_0 = arith.constant 0 : i32
    %c0_i32_1 = arith.constant 0 : i32
    return %arg0, %c0_i32, %c0_i32_0 : i32, i32, i32
  }
}

</mosaic_0001>

<bundles_post_ra>
// kernel: osn_net_forward.1
= control target key start
LH: loop header
LB: loop body
LE: loop exit
PB: predicated region body
PF: predicated region fallthrough
CT: control target
= control target key end

     0   :  { %s5926_s24 = smov 0   ;;  %s7363_s0 = inlined_call_operand.vmem [shape: f32[2,18,18,3], index: 0, kind: input, shape index: {}]   ;;  %s7364_s1 = inlined_call_operand.vmem [shape: f32[9,3,32], index: 1, kind: input, shape index: {}]   ;;  %s7365_s2 = inlined_call_operand.vmem [shape: f32[1,32], index: 2, kind: input, shape index: {}]   ;;  %s7366_s3 = inlined_call_operand.vmem [shape: f32[32,3], index: 3, kind: input, shape index: {}]   ;;  %s7367_s4 = inlined_call_operand.vmem [shape: f32[1,3], index: 4, kind: input, shape index: {}]   ;;  %s7368_s5 = inlined_call_operand.vmem [shape: f32[3,10,256], index: 5, kind: input, shape index: {}]   ;;  %s7369_s6 = inlined_call_operand.vmem [shape: f32[10,1], index: 6, kind: input, shape index: {}]   ;;  %s7370_s7 = inlined_call_operand.vmem [shape: f32[2,10,1], index: 7, kind: output, shape index: {}]  }
   0x1 LB: > { %s4074_s25 = sadd.s32 4294967295, %s5882_s24   ;;  %p4078_p0 = scmp.ge.s32.totalorder %s5882_s24, 1  ;;  %s5882_s24 = sphi %s5926_s24, %s17_s24  }
   0x2   : > { %p237_p1 = scmp.lt.s32.totalorder %s5882_s24, 3 }
   0x4   : > { %p238_p2 = pnand %p4078_p0, %p237_p1 }
   0x6   : > { %241 = sbr.rel (%p238_p2) target bundleno = 1238 (0x4d6), region = 48 }
   0xd   : > { %vm638_vm0 = vcmask 1042432   ;;  %v5937_v0 = vld [vmem:[%s7364_s1 + $0xc] sm:$0x7]  ;;  %p269_p3 = scmp.lt.s32.totalorder %s4074_s25, 1  ;;  %v4136_v1 = vld [vmem:[%s7364_s1 + $0x4] sm:$0x7] }
   0xe   : > { %5083 = vmatprep.subr.msk.mxu0 %vm638_vm0, %v5937_v0  ;;  %v4271_v2 = vld [vmem:[%s7364_s1 + $0x10] sm:$0x7]  ;;  %v5950_v3 = vld [vmem:[%s7364_s1] sm:$0x7]  ;;  %4933 = vmatprep.subr.msk.mxu1 %vm638_vm0, %v4136_v1  ;;  %vm573_vm1 = vcmask 23552   ;;  %vm490_vm2 = vcmask 1046528  }
   0xf   : > { %5084 = vmatpush3.msk.msra.mxu0 %vm638_vm0, %v5937_v0  ;;  %s7522_s25 = smov (!%p269_p3, %s4074_s25), 1  ;;  %4934 = vmatpush3.msk.msra.mxu1 %vm638_vm0, %v4136_v1  ;;  %v5997_v31 = vld [vmem:[%s7364_s1 + $0x14] sm:$0x7]  ;;  %vm1159_vm3 = vcmask 1045504   ;;  %vm3270_vm4 = vcmask 261120   ;;  %s5884_s19 = smov 127  }
  0x10   : > { %5133 = vmatprep.subr.msk.mxu0 %vm638_vm0, %v4271_v2  ;;  %s5801_s11 = smul.u32 432, %s7522_s25  ;;  %4983 = vmatprep.subr.msk.mxu1 %vm638_vm0, %v5950_v3  ;;  %s5885_s20 = smov 126   ;;  %vm4015_vm5 = vcmask 7168   ;;  %vm4017_vm6 = vcmask 1024  }
  0x11   : > { %s4485_s23 = sshll.u32 %s7522_s25, 4 }
  0x12   : > { %s5965_s14 = scalar_lea.vmem %s7363_s0, %s5801_s11  ;;  %s278_s30 = scalar_lea.vmem %s7370_s7, %s4485_s23 }
  0x13   : > { %v282_v4 = vld [vmem:[%s5965_s14 + $0x18] sm:$0xff]  ;;  %v283_v5 = vld [vmem:[%s5965_s14 + $0x20] sm:$0xff]  ;;  %v280_v9 = vld [vmem:[%s5965_s14 + $0x8] sm:$0xff] }
  0x14   : > { %v279_v6 = vld [vmem:[%s5965_s14] sm:$0xff]  ;;  %v4085_v7 = vadd.f32 -0.5, %v282_v4  ;;  %v4086_v8 = vadd.f32 -0.5, %v283_v5  ;;  %v281_v11 = vld [vmem:[%s5965_s14 + $0x10] sm:$0x3]  ;;  %v4083_v12 = vadd.f32 -0.5, %v280_v9 }
  0x15   : > { %v4082_v10 = vadd.f32 -0.5, %v279_v6  ;;  %v4084_v13 = vadd.f32 -0.5, %v281_v11  ;;  %v285_v14 = vld [vmem:[%s5965_s14 + $0x30] sm:$0xff]  ;;  %v286_v15 = vld [vmem:[%s5965_s14 + $0x38] sm:$0xff]  ;;  %v284_v16 = vld [vmem:[%s5965_s14 + $0x28] sm:$0x3] }
  0x16   : > { %v5975_v17 = vmul.f32 2.0, %v4085_v7  ;;  %v5977_v18 = vmul.f32 2.0, %v4086_v8  ;;  %v4088_v20 = vadd.f32 -0.5, %v285_v14  ;;  %v5981_v21 = vmul.f32 2.0, %v4083_v12  ;;  %v288_v25 = vld [vmem:[%s5965_s14 + $0x48] sm:$0xff]  ;;  %v289_v26 = vld [vmem:[%s5965_s14 + $0x50] sm:$0xff] }
  0x17   : > { %v5979_v19 = vmul.f32 2.0, %v4082_v10  ;;  %v5983_v22 = vmul.f32 2.0, %v4084_v13  ;;  %v4089_v23 = vadd.f32 -0.5, %v286_v15  ;;  %v4087_v24 = vadd.f32 -0.5, %v284_v16  ;;  %v287_v35 = vld [vmem:[%s5965_s14 + $0x40] sm:$0x3] }
  0x18   : > { %5085 = vmatprep.mubr.msk.f32.mxu0 %vm573_vm1, %v5975_v17  ;;  %v5990_v28 = vmul.f32 2.0, %v4088_v20  ;;  %v496_v29 = vrot.slane %v5975_v17, 1  ;;  %v497_v30 = vrot.slane %v5977_v18, 1  ;;  %v492_v32 = vrot.slane %v5981_v21, 1  ;;  %v291_v40 = vld [vmem:[%s5965_s14 + $0x60] sm:$0xff]  ;;  %v292_v41 = vld [vmem:[%s5965_s14 + $0x68] sm:$0xff] }
  0x19   : > { %7426 = vst [vmem:[#allocation2_spill] sm:$0xff] %v5983_v22  ;;  %v491_v27 = vrot.slane %v5979_v19, 1  ;;  %5086 = vmatmul.mubr.msk.f32.vlgmr.msra.gmra.mrb[0].mxu0 %vm573_vm1, %v5977_v18  ;;  %v494_v33 = vrot.slane %v5983_v22, 1  ;;  %v6003_v34 = vmul.f32 2.0, %v4089_v23  ;;  %v6011_v37 = vmul.f32 2.0, %v4087_v24  ;;  %v294_v49 = vld [vmem:[%s5965_s14 + $0x78] sm:$0xff] }
  0x1a   : > { %5088 = vmatprep.mubr.msk.f32.mxu0 %vm573_vm1, %v5990_v28  ;;  %v6009_v36 = vsel %vm490_vm2, %v496_v29, %v497_v30  ;;  %v4091_v38 = vadd.f32 -0.5, %v288_v25  ;;  %v4092_v39 = vadd.f32 -0.5, %v289_v26  ;;  %5134 = vmatpush3.msk.msra.mxu0 %vm638_vm0, %v4271_v2  ;;  %v501_v44 = vrot.slane %v5990_v28, 1  ;;  %v290_v46 = vld [vmem:[%s5965_s14 + $0x58] sm:$0x3]  ;;  %v295_v59 = vld [vmem:[%s5965_s14 + $0x80] sm:$0xff] }
  0x1b   : > { %v493_v42 = vsel %vm490_vm2, %v491_v27, %v492_v32  ;;  %v495_v43 = vsel %vm490_vm2, %v492_v32, %v494_v33  ;;  %v502_v45 = vrot.slane %v6003_v34, 1  ;;  %5183 = vmatprep.subr.msk.mxu0 %vm638_vm0, %v5997_v31  ;;  %v499_v47 = vrot.slane %v6011_v37, 1  ;;  %v293_v54 = vld [vmem:[%s5965_s14 + $0x70] sm:$0x3]  ;;  %v298_v8 = vld [vmem:[%s5965_s14 + $0x98] sm:$0xff]  ;;  %v300_v20 = vld [vmem:[%s5965_s14 + $0xa8] sm:$0xff] }
  0x1c   : > { %4935 = vmatprep.mubr.msk.f32.mxu1 %vm573_vm1, %v493_v42  ;;  %v6025_v48 = vmul.f32 2.0, %v4091_v38  ;;  %v6031_v50 = vmul.f32 2.0, %v4092_v39  ;;  %v4090_v51 = vadd.f32 -0.5, %v287_v35  ;;  %v4094_v52 = vadd.f32 -0.5, %v291_v40  ;;  %v297_v1 = vld [vmem:[%s5965_s14 + $0x90] sm:$0xff] }
  0x1d   : > { %4936 = vmatmul.mubr.msk.f32.vlgmr.msra.gmra.mrb[0].mxu1 %vm573_vm1, %v495_v43  ;;  %5089 = vmatmul.mubr.msk.f32.gmra.mrb[2].mxu0 %vm573_vm1, %v6003_v34  ;;  %v4095_v53 = vadd.f32 -0.5, %v292_v41  ;;  %v6037_v55 = vsel %vm490_vm2, %v497_v30, %v499_v47  ;;  %v6042_v56 = vsel %vm490_vm2, %v501_v44, %v502_v45  ;;  %v4093_v58 = vadd.f32 -0.5, %v290_v46  ;;  %v296_v12 = vld [vmem:[%s5965_s14 + $0x88] sm:$0x3]  ;;  %v299_v23 = vld [vmem:[%s5965_s14 + $0xa0] sm:$0x3] }
  0x1e   : > { %4938 = vmatprep.mubr.msk.f32.mxu1 %vm573_vm1, %v6009_v36  ;;  %5091 = vmatprep.mubr.msk.f32.mxu0 %vm573_vm1, %v6025_v48  ;;  %7427 = vst [vmem:[#allocation3_spill] sm:$0xff] %v6042_v56  ;;  %v506_v57 = vrot.slane %v6025_v48, 1  ;;  %v6046_v60 = vmul.f32 2.0, %v4090_v51  ;;  %v6048_v61 = vmul.f32 2.0, %v4094_v52  ;;  %v507_v62 = vrot.slane %v6031_v50, 1  ;;  %v301_v29 = vld [vmem:[%s5965_s14 + $0xb0] sm:$0xff] }
  0x1f   : > { %v4097_v63 = vadd.f32 -0.5, %v294_v49  ;;  %4984 = vmatpush3.msk.msra.mxu1 %vm638_vm0, %v5950_v3  ;;  %v6054_v2 = vmul.f32 2.0, %v4093_v58  ;;  %v4096_v4 = vadd.f32 -0.5, %v293_v54  ;;  %v6061_v6 = vmul.f32 2.0, %v4095_v53  ;;  %v302_v38 = vld [vmem:[%s5965_s14 + $0xb8] sm:$0x3] }
  0x20   : > { %v504_v5 = vrot.slane %v6046_v60, 1  ;;  %v4098_v7 = vadd.f32 -0.5, %v295_v59  ;;  %v4100_v11 = vadd.f32 -0.5, %v297_v1  ;;  %v6078_v14 = vsel %vm490_vm2, %v506_v57, %v507_v62  ;;  %v303_v43 = vld [vmem:[%s5965_s14 + $0xc0] sm:$0xff]  ;;  %v304_v47 = vld [vmem:[%s5965_s14 + $0xc8] sm:$0xff] }
  0x21   : > { %4939 = vmatmul.mubr.msk.f32.gmra.mrb[2].mxu1 %vm573_vm1, %v6037_v55  ;;  %5092 = vmatmul.mubr.msk.f32.gmra.mrb[4].mxu0 %vm573_vm1, %v6031_v50  ;;  %v509_v3 = vrot.slane %v6054_v2, 1  ;;  %v6069_v9 = vmul.f32 2.0, %v4097_v63  ;;  %v6071_v10 = vmul.f32 2.0, %v4096_v4  ;;  %7430 = vst [vmem:[#allocation6_spill] sm:$0xff] %v6078_v14  ;;  %v511_v15 = vrot.slane %v6048_v61, 1  ;;  %v307_v4 = vld [vmem:[%s5965_s14 + $0xe0] sm:$0xff] }
  0x22   : > { %4941 = vmatprep.mubr.msk.f32.mxu1 %vm573_vm1, %v6042_v56  ;;  %5094 = vmatprep.mubr.msk.f32.mxu0 %vm573_vm1, %v6048_v61  ;;  %v6075_v13 = vsel %vm490_vm2, %v502_v45, %v504_v5  ;;  %v512_v16 = vrot.slane %v6061_v6, 1  ;;  %v6091_v25 = vmul.f32 2.0, %v4098_v7  ;;  %v4101_v26 = vadd.f32 -0.5, %v298_v8  ;;  %v305_v63 = vld [vmem:[%s5965_s14 + $0xd0] sm:$0x3] }
  0x23   : > { %7428 = vst [vmem:[#allocation4_spill] sm:$0xff] %v6071_v10  ;;  %7429 = vst [vmem:[#allocation5_spill] sm:$0xff] %v6075_v13  ;;  %v6089_v24 = vsel %vm490_vm2, %v507_v62, %v509_v3  ;;  %v4099_v27 = vadd.f32 -0.5, %v296_v12  ;;  %v514_v30 = vrot.slane %v6071_v10, 1  ;;  %v6099_v32 = vmul.f32 2.0, %v4100_v11  ;;  %v306_v62 = vld [vmem:[%s5965_s14 + $0xd8] sm:$0xff] }
  0x24   : > { %7431 = vst [vmem:[#allocation7_spill] sm:$0xff] %v6089_v24  ;;  %v4103_v33 = vadd.f32 -0.5, %v300_v20  ;;  %v4102_v35 = vadd.f32 -0.5, %v299_v23  ;;  %v6103_v39 = vsel %vm490_vm2, %v511_v15, %v512_v16  ;;  %v516_v40 = vrot.slane %v6069_v9, 1  ;;  %v6140_v5 = vld [vmem:[%s7364_s1 + $0x8] sm:$0x7] }
  0x25   : > { %4942 = vmatmul.mubr.msk.f32.gmra.mrb[4].mxu1 %vm573_vm1, %v6075_v13  ;;  %5095 = vmatmul.mubr.msk.f32.gmra.mrb[6].mxu0 %vm573_vm1, %v6061_v6  ;;  %7432 = vst [vmem:[#allocation8_spill] sm:$0xff] %v6103_v39  ;;  %v517_v41 = vrot.slane %v6091_v25, 1  ;;  %v6107_v42 = vmul.f32 2.0, %v4099_v27  ;;  %v6114_v44 = vmul.f32 2.0, %v4101_v26  ;;  %v4104_v45 = vadd.f32 -0.5, %v301_v29 }
  0x26   : > { %4944 = vmatprep.mubr.msk.f32.mxu1 %vm573_vm1, %v6078_v14  ;;  %5097 = vmatprep.mubr.msk.f32.mxu0 %vm573_vm1, %v6069_v9  ;;  %v6116_v46 = vmul.f32 2.0, %v4102_v35  ;;  %v4105_v49 = vadd.f32 -0.5, %v302_v38  ;;  %v6122_v51 = vsel %vm490_vm2, %v512_v16, %v514_v30  ;;  %v6127_v53 = vmul.f32 2.0, %v4103_v33  ;;  %v308_v29 = vld [vmem:[%s5965_s14 + $0xe8] sm:$0x3]  ;;  %v309_v33 = vld [vmem:[%s5965_s14 + $0xf0] sm:$0xff] }
  0x27   : > { %7433 = vst [vmem:[#allocation9_spill] sm:$0xff] %v6107_v42  ;;  %7435 = vst [vmem:[#allocation11_spill] sm:$0xff] %v6122_v51  ;;  %v519_v52 = vrot.slane %v6107_v42, 1  ;;  %v4106_v54 = vadd.f32 -0.5, %v303_v43  ;;  %v6130_v57 = vsel %vm490_vm2, %v516_v40, %v517_v41  ;;  %v521_v58 = vrot.slane %v6099_v32, 1  ;;  %5033 = vmatprep.subr.msk.mxu1 %vm638_vm0, %v6140_v5  ;;  %v310_v35 = vld [vmem:[%s5965_s14 + $0xf8] sm:$0xff] }
  0x28   : > { %7434 = vst [vmem:[#allocation10_spill] sm:$0xff] %v6116_v46  ;;  %7436 = vst [vmem:[#allocation12_spill] sm:$0xff] %v6130_v57  ;;  %v522_v59 = vrot.slane %v6114_v44, 1  ;;  %v4107_v1 = vadd.f32 -0.5, %v304_v47  ;;  %v6146_v7 = vmul.f32 2.0, %v4104_v45  ;;  %v524_v8 = vrot.slane %v6116_v46, 1 }
  0x29   : > { %4945 = vmatmul.mubr.msk.f32.gmra.mrb[6].mxu1 %vm573_vm1, %v6089_v24  ;;  %5098 = vmatmul.mubr.msk.f32.gmra.mrb[8].mxu0 %vm573_vm1, %v6091_v25  ;;  %v6149_v3 = vmul.f32 2.0, %v4105_v49  ;;  %v6154_v11 = vsel %vm490_vm2, %v517_v41, %v519_v52  ;;  %v6158_v12 = vmul.f32 2.0, %v4106_v54  ;;  %v4109_v15 = vadd.f32 -0.5, %v306_v62  ;;  %v311_v52 = vld [vmem:[%s5965_s14 + $0x100] sm:$0x3]  ;;  %v318_v42 = vld [vmem:[%s5965_s14 + $0x138] sm:$0xff] }
  0x2a   : > { %4947 = vmatprep.mubr.msk.f32.mxu1 %vm573_vm1, %v6103_v39  ;;  %5100 = vmatprep.mubr.msk.f32.mxu0 %vm573_vm1, %v6099_v32  ;;  %7438 = vst [vmem:[#allocation14_spill] sm:$0xff] %v6154_v11  ;;  %v4108_v16 = vadd.f32 -0.5, %v305_v63  ;;  %v6161_v20 = vsel %vm490_vm2, %v521_v58, %v522_v59  ;;  %v526_v23 = vrot.slane %v6127_v53, 1  ;;  %v527_v26 = vrot.slane %v6146_v7, 1  ;;  %v312_v63 = vld [vmem:[%s5965_s14 + $0x108] sm:$0xff] }
  0x2b   : > { %7437 = vst [vmem:[#allocation13_spill] sm:$0xff] %v6149_v3  ;;  %7439 = vst [vmem:[#allocation15_spill] sm:$0xff] %v6161_v20  ;;  %v4110_v27 = vadd.f32 -0.5, %v307_v4  ;;  %v6168_v30 = vmul.f32 2.0, %v4107_v1  ;;  %v6177_v38 = vsel %vm490_vm2, %v522_v59, %v524_v8  ;;  %v529_v40 = vrot.slane %v6149_v3, 1  ;;  %v313_v1 = vld [vmem:[%s5965_s14 + $0x110] sm:$0xff] }
  0x2c   : > { %7440 = vst [vmem:[#allocation16_spill] sm:$0xff] %v6177_v38  ;;  %v531_v41 = vrot.slane %v6158_v12, 1  ;;  %v6185_v43 = vmul.f32 2.0, %v4109_v15  ;;  %v6188_v47 = vmul.f32 2.0, %v4108_v16  ;;  %v4111_v49 = vadd.f32 -0.5, %v308_v29  ;;  %v316_v3 = vld [vmem:[%s5965_s14 + $0x128] sm:$0xff] }
  0x2d   : > { %4948 = vmatmul.mubr.msk.f32.gmra.mrb[8].mxu1 %vm573_vm1, %v6122_v51  ;;  %5101 = vmatmul.mubr.msk.f32.gmra.mrb[10].mxu0 %vm573_vm1, %v6114_v44  ;;  %v532_v45 = vrot.slane %v6168_v30, 1  ;;  %v6192_v54 = vsel %vm490_vm2, %v526_v23, %v527_v26  ;;  %v6194_v58 = vmul.f32 2.0, %v4110_v27  ;;  %v4112_v59 = vadd.f32 -0.5, %v309_v33  ;;  %v314_v33 = vld [vmem:[%s5965_s14 + $0x118] sm:$0x3] }
  0x2e   : > { %4950 = vmatprep.mubr.msk.f32.mxu1 %vm573_vm1, %v6130_v57  ;;  %5103 = vmatprep.mubr.msk.f32.mxu0 %vm573_vm1, %v6127_v53  ;;  %7441 = vst [vmem:[#allocation17_spill] sm:$0xff] %v6188_v47  ;;  %7442 = vst [vmem:[#allocation18_spill] sm:$0xff] %v6192_v54  ;;  %v4113_v62 = vadd.f32 -0.5, %v310_v35  ;;  %v536_v4 = vrot.slane %v6185_v43, 1  ;;  %v4114_v15 = vadd.f32 -0.5, %v311_v52  ;;  %v6207_v16 = vsel %vm490_vm2, %v527_v26, %v529_v40  ;;  %v315_v40 = vld [vmem:[%s5965_s14 + $0x120] sm:$0xff] }
  0x2f   : > { %7443 = vst [vmem:[#allocation19_spill] sm:$0xff] %v6194_v58  ;;  %v537_v8 = vrot.slane %v6194_v58, 1  ;;  %7444 = vst [vmem:[#allocation20_spill] sm:$0xff] %v6207_v16  ;;  %v6212_v23 = vsel %vm490_vm2, %v531_v41, %v532_v45  ;;  %v534_v27 = vrot.slane %v6188_v47, 1  ;;  %v6215_v29 = vmul.f32 2.0, %v4111_v49 }
  0x30   : > { %7445 = vst [vmem:[#allocation21_spill] sm:$0xff] %v6212_v23  ;;  %v6218_v35 = vmul.f32 2.0, %v4112_v59  ;;  %v6220_v52 = vmul.f32 2.0, %v4113_v62  ;;  %v4115_v22 = vadd.f32 -0.5, %v312_v63  ;;  %v4116_v26 = vadd.f32 -0.5, %v313_v1 }
  0x31   : > { %4951 = vmatmul.mubr.msk.f32.gmra.mrb[10].mxu1 %vm573_vm1, %v6154_v11  ;;  %5104 = vmatmul.mubr.msk.f32.gmra.mrb[12].mxu0 %vm573_vm1, %v6146_v7  ;;  %7446 = vst [vmem:[#allocation22_spill] sm:$0xff] %v6215_v29  ;;  %v6229_v41 = vsel %vm490_vm2, %v536_v4, %v537_v8  ;;  %v6231_v49 = vmul.f32 2.0, %v4114_v15  ;;  %v4117_v59 = vadd.f32 -0.5, %v314_v33  ;;  %v6236_v62 = vsel %vm490_vm2, %v532_v45, %v534_v27  ;;  %v317_v46 = vld [vmem:[%s5965_s14 + $0x130] sm:$0x3] }
  0x32   : > { %4953 = vmatprep.mubr.msk.f32.mxu1 %vm573_vm1, %v6161_v20  ;;  %5106 = vmatprep.mubr.msk.f32.mxu0 %vm573_vm1, %v6158_v12  ;;  %7447 = vst [vmem:[#allocation23_spill] sm:$0xff] %v6218_v35  ;;  %7448 = vst [vmem:[#allocation24_spill] sm:$0xff] %v6220_v52  ;;  %v539_v63 = vrot.slane %v6215_v29, 1  ;;  %v4118_v1 = vadd.f32 -0.5, %v315_v40  ;;  %v4119_v47 = vadd.f32 -0.5, %v316_v3  ;;  %v541_v4 = vrot.slane %v6218_v35, 1 }
  0x33   : > { %7449 = vst [vmem:[#allocation25_spill] sm:$0xff] %v6229_v41  ;;  %7450 = vst [vmem:[#allocation26_spill] sm:$0xff] %v6231_v49  ;;  %v542_v15 = vrot.slane %v6220_v52, 1  ;;  %v6245_v33 = vmul.f32 2.0, %v4115_v22  ;;  %v6247_v10 = vmul.f32 2.0, %v4116_v26  ;;  %v6255_v3 = vmul.f32 2.0, %v4117_v59 }
  0x34   : > { %7451 = vst [vmem:[#allocation27_spill] sm:$0xff] %v6236_v62  ;;  %v4120_v45 = vadd.f32 -0.5, %v317_v46  ;;  %v4121_v27 = vadd.f32 -0.5, %v318_v42  ;;  %v6260_v22 = vld [vmem:[%s7364_s1 + $0x18] sm:$0x7]  ;;  %v6265_v26 = vsel %vm490_vm2, %v537_v8, %v539_v63  ;;  %v6271_v40 = vmul.f32 2.0, %v4119_v47 }
  0x35   : > { %4954 = vmatmul.mubr.msk.f32.gmra.mrb[12].mxu1 %vm573_vm1, %v6177_v38  ;;  %5107 = vmatmul.mubr.msk.f32.gmra.mrb[14].mxu0 %vm573_vm1, %v6168_v30  ;;  %7452 = vst [vmem:[#allocation28_spill] sm:$0xff] %v6245_v33  ;;  %7453 = vst [vmem:[#allocation29_spill] sm:$0xff] %v6247_v10  ;;  %v6274_v42 = vsel %vm490_vm2, %v541_v4, %v542_v15  ;;  %v546_v59 = vrot.slane %v6245_v33, 1  ;;  %v320_v29 = vld [vmem:[%s5965_s14 + $0x148] sm:$0x3]  ;;  %v321_v8 = vld [vmem:[%s5965_s14 + $0x150] sm:$0xff] }
  0x36   : > { %4956 = vmatprep.mubr.msk.f32.mxu1 %vm573_vm1, %v6192_v54  ;;  %5109 = vmatprep.mubr.msk.f32.mxu0 %vm573_vm1, %v6185_v43  ;;  %7454 = vst [vmem:[#allocation30_spill] sm:$0xff] %v6255_v3  ;;  %7455 = vst [vmem:[#allocation31_spill] sm:$0xff] %v6265_v26  ;;  %v322_v63 = vld [vmem:[%s5965_s14 + $0x158] sm:$0xff]  ;;  %v325_v33 = vld [vmem:[%s5965_s14 + $0x170] sm:$0xff] }
  0x37   : > { %7456 = vst [vmem:[#allocation32_spill] sm:$0xff] %v6271_v40  ;;  %7457 = vst [vmem:[#allocation33_spill] sm:$0xff] %v6274_v42 }
  0x39   : > { %4957 = vmatmul.mubr.msk.f32.gmra.mrb[14].mxu1 %vm573_vm1, %v6207_v16  ;;  %5110 = vmatmul.mubr.msk.f32.gmra.mrb[16].mxu0 %vm573_vm1, %v6194_v58  ;;  %v319_v58 = vld [vmem:[%s5965_s14 + $0x140] sm:$0xff] }
  0x3a   : > { %4959 = vmatprep.mubr.msk.f32.mxu1 %vm573_vm1, %v6212_v23  ;;  %5135 = vmatprep.mubr.msk.f32.mxu0 %vm573_vm1, %v6009_v36  ;;  %v544_v36 = vrot.slane %v6231_v49, 1  ;;  %v4122_v46 = vadd.f32 -0.5, %v319_v58  ;;  %v547_v49 = vrot.slane %v6247_v10, 1  ;;  %v549_v58 = vrot.slane %v6255_v3, 1  ;;  %v324_v10 = vld [vmem:[%s5965_s14 + $0x168] sm:$0xff] }
  0x3b   : > { %v4125_v3 = vadd.f32 -0.5, %v322_v63 }
  0x3c   : > { %v6290_v47 = vsel %vm490_vm2, %v542_v15, %v544_v36  ;;  %v4123_v15 = vadd.f32 -0.5, %v320_v29  ;;  %v6306_v36 = vsel %vm490_vm2, %v546_v59, %v547_v49 }
  0x3d   : > { %4960 = vmatmul.mubr.msk.f32.gmra.mrb[16].mxu1 %vm573_vm1, %v6236_v62  ;;  %5136 = vmatmul.mubr.msk.f32.vlgmr.msra.gmra.mrb[0].mxu0 %vm573_vm1, %v6037_v55  ;;  %v6269_v55 = vmul.f32 2.0, %v4118_v1  ;;  %7458 = vst [vmem:[#allocation34_spill] sm:$0xff] %v6290_v47  ;;  %v6295_v1 = vmul.f32 2.0, %v4121_v27  ;;  %7461 = vst [vmem:[#allocation37_spill] sm:$0xff] %v6306_v36  ;;  %v323_v27 = vld [vmem:[%s5965_s14 + $0x160] sm:$0x3] }
  0x3e   : > { %4962 = vmatprep.mubr.msk.f32.mxu1 %vm573_vm1, %v6229_v41  ;;  %5138 = vmatprep.mubr.msk.f32.mxu0 %vm573_vm1, %v6042_v56  ;;  %v6303_v56 = vmul.f32 2.0, %v4122_v46  ;;  %v6328_v63 = vmul.f32 2.0, %v4123_v15 }
  0x3f   : > { %5184 = vmatpush3.msk.msra.mxu0 %vm638_vm0, %v5997_v31  ;;  %v6293_v31 = vmul.f32 2.0, %v4120_v45  ;;  %7460 = vst [vmem:[#allocation36_spill] sm:$0xff] %v6295_v1  ;;  %v551_v4 = vrot.slane %v6269_v55, 1  ;;  %v4124_v45 = vadd.f32 -0.5, %v321_v8  ;;  %v556_v46 = vrot.slane %v6295_v1, 1 }
  0x40   : > { %5233 = vmatprep.subr.msk.mxu0 %vm638_vm0, %v6260_v22  ;;  %v557_v8 = vrot.slane %v6303_v56, 1  ;;  %v4128_v1 = vadd.f32 -0.5, %v325_v33 }
  0x41   : > { %4963 = vmatmul.mubr.msk.f32.gmra.mrb[18].mxu1 %vm573_vm1, %v6265_v26  ;;  %5139 = vmatmul.mubr.msk.f32.gmra.mrb[2].mxu0 %vm573_vm1, %v6075_v13  ;;  %7459 = vst [vmem:[#allocation35_spill] sm:$0xff] %v6293_v31  ;;  %v552_v13 = vrot.slane %v6271_v40, 1  ;;  %v554_v29 = vrot.slane %v6293_v31, 1  ;;  %v4127_v31 = vadd.f32 -0.5, %v324_v10  ;;  %v326_v40 = vld [vmem:[%s5965_s14 + $0x178] sm:$0x3] }
  0x42   : > { %4965 = vmatprep.mubr.msk.f32.mxu1 %vm573_vm1, %v6274_v42  ;;  %5141 = vmatprep.mubr.msk.f32.mxu0 %vm573_vm1, %v6078_v14  ;;  %v6316_v14 = vsel %vm490_vm2, %v547_v49, %v549_v58  ;;  %v6330_v49 = vmul.f32 2.0, %v4124_v45  ;;  %v6332_v58 = vmul.f32 2.0, %v4125_v3  ;;  %v6347_v3 = vsel %vm490_vm2, %v556_v46, %v557_v8 }
  0x43   : > { %7462 = vst [vmem:[#allocation38_spill] sm:$0xff] %v6316_v14  ;;  %v6325_v59 = vsel %vm490_vm2, %v551_v4, %v552_v13  ;;  %v6340_v4 = vsel %vm490_vm2, %v552_v13, %v554_v29  ;;  %7465 = vst [vmem:[#allocation41_spill] sm:$0xff] %v6347_v3  ;;  %v559_v10 = vrot.slane %v6328_v63, 1  ;;  %v4129_v15 = vadd.f32 -0.5, %v326_v40 }
  0x44   : > { %7463 = vst [vmem:[#allocation39_spill] sm:$0xff] %v6325_v59  ;;  %7464 = vst [vmem:[#allocation40_spill] sm:$0xff] %v6340_v4  ;;  %v561_v45 = vrot.slane %v6330_v49, 1  ;;  %v6354_v13 = vmul.f32 2.0, %v4127_v31  ;;  %v6356_v29 = vmul.f32 2.0, %v4128_v1 }
  0x45   : > { %4966 = vmatmul.mubr.msk.f32.gmra.mrb[20].mxu1 %vm573_vm1, %v6290_v47  ;;  %5142 = vmatmul.mubr.msk.f32.gmra.mrb[4].mxu0 %vm573_vm1, %v6089_v24  ;;  %v4126_v24 = vadd.f32 -0.5, %v323_v27  ;;  %v562_v27 = vrot.slane %v6332_v58, 1  ;;  %v6370_v31 = vmul.f32 2.0, %v4129_v15 }
  0x46   : > { %4968 = vmatprep.mubr.msk.f32.mxu1 %vm573_vm1, %v6306_v36  ;;  %5144 = vmatprep.mubr.msk.f32.mxu0 %vm573_vm1, %v6103_v39  ;;  %v566_v46 = vrot.slane %v6354_v13, 1 }
  0x47   : > { %v6350_v33 = vmul.f32 2.0, %v4126_v24  ;;  %v6365_v24 = vsel %vm490_vm2, %v557_v8, %v559_v10  ;;  %v6373_v1 = vsel %vm490_vm2, %v561_v45, %v562_v27  ;;  %v569_v10 = vrot.slane %v6370_v31, 1 }
  0x48   : > { %7466 = vst [vmem:[#allocation42_spill] sm:$0xff] %v6365_v24  ;;  %7467 = vst [vmem:[#allocation43_spill] sm:$0xff] %v6373_v1 }
  0x49   : > { %4969 = vmatmul.mubr.msk.f32.gmra.mrb[22].mxu1 %vm573_vm1, %v6316_v14  ;;  %5145 = vmatmul.mubr.msk.f32.gmra.mrb[6].mxu0 %vm573_vm1, %v6122_v51  ;;  %v564_v40 = vrot.slane %v6350_v33, 1 }
  0x4a   : > { %4971 = vmatprep.mubr.msk.f32.mxu1 %vm573_vm1, %v6325_v59  ;;  %5147 = vmatprep.mubr.msk.f32.mxu0 %vm573_vm1, %v6130_v57  ;;  %v1205_v57 = vrot.slane %v6185_v43, 2 }
  0x4b   : > { %v6384_v8 = vsel %vm490_vm2, %v562_v27, %v564_v40  ;;  %v328_v27 = vld [vmem:[%s5965_s14 + $0x188] sm:$0xff] }
  0x4c   : > { %7468 = vst [vmem:[#allocation44_spill] sm:$0xff] %v6384_v8  ;;  %v4131_v40 = vadd.f32 -0.5, %v328_v27 }
  0x4d   : > { %4972 = vmatmul.mubr.msk.f32.gmra.mrb[24].mxu1 %vm573_vm1, %v6340_v4  ;;  %5148 = vmatmul.mubr.msk.f32.gmra.mrb[8].mxu0 %vm573_vm1, %v6154_v11  ;;  %v567_v11 = vrot.slane %v6356_v29, 1 }
  0x4e   : > { %4974 = vmatprep.mubr.msk.f32.mxu1 %vm573_vm1, %v6347_v3  ;;  %5150 = vmatprep.mubr.msk.f32.mxu0 %vm573_vm1, %v6161_v20  ;;  %v1161_v20 = vrot.slane %v5981_v21, 2 }
  0x4f   : > { %v6390_v15 = vsel %vm490_vm2, %v566_v46, %v567_v11  ;;  %v6399_v45 = vsel %vm490_vm2, %v567_v11, %v569_v10  ;;  %v327_v11 = vld [vmem:[%s5965_s14 + $0x180] sm:$0xff]  ;;  %v329_v46 = vld [vmem:[%s5965_s14 + $0x190] sm:$0x3] }
  0x50   : > { %7469 = vst [vmem:[#allocation45_spill] sm:$0xff] %v6390_v15  ;;  %7470 = vst [vmem:[#allocation46_spill] sm:$0xff] %v6399_v45  ;;  %v4132_v10 = vadd.f32 -0.5, %v329_v46 }
  0x51   : > { %4975 = vmatmul.mubr.msk.f32.gmra.mrb[26].mxu1 %vm573_vm1, %v6365_v24  ;;  %5151 = vmatmul.mubr.msk.f32.gmra.mrb[10].mxu0 %vm573_vm1, %v6177_v38 }
  0x52   : > { %4977 = vmatprep.mubr.msk.f32.mxu1 %vm573_vm1, %v6373_v1  ;;  %5153 = vmatprep.mubr.msk.f32.mxu0 %vm573_vm1, %v6192_v54  ;;  %v1201_v54 = vrot.slane %v6168_v30, 2 }
  0x55   : > { %4978 = vmatmul.mubr.msk.f32.gmra.mrb[28].mxu1 %vm573_vm1, %v6384_v8  ;;  %5154 = vmatmul.mubr.msk.f32.gmra.mrb[12].mxu0 %vm573_vm1, %v6207_v16  ;;  %v1200_v16 = vrot.slane %v6158_v12, 2 }
  0x56   : > { %4980 = vmatprep.mubr.msk.f32.mxu1 %vm573_vm1, %v6390_v15  ;;  %5156 = vmatprep.mubr.msk.f32.mxu0 %vm573_vm1, %v6212_v23  ;;  %v7480_v23 = vld [vmem:[#allocation36_spill] sm:$0xff] }
  0x57   : > { %v6622_v38 = vsel %vm1159_vm3, %v1200_v16, %v1201_v54 }
  0x59   : > { %4981 = vmatmul.mubr.msk.f32.gmra.mrb[30].mxu1 %vm573_vm1, %v6399_v45  ;;  %5157 = vmatmul.mubr.msk.f32.gmra.mrb[14].mxu0 %vm573_vm1, %v6236_v62  ;;  %v7479_v62 = vld [vmem:[#allocation32_spill] sm:$0xff] }
  0x5a   : > { %4985 = vmatprep.mubr.msk.f32.mxu1 %vm573_vm1, %v5979_v19  ;;  %5159 = vmatprep.mubr.msk.f32.mxu0 %vm573_vm1, %v6229_v41  ;;  %v1196_v41 = vrot.slane %v6146_v7, 2 }
  0x5d   : > { %4986 = vmatmul.mubr.msk.f32.vlgmr.msra.gmra.mrb[0].mxu1 %vm573_vm1, %v5981_v21  ;;  %5160 = vmatmul.mubr.msk.f32.gmra.mrb[16].mxu0 %vm573_vm1, %v6265_v26  ;;  %v1195_v26 = vrot.slane %v6127_v53, 2  ;;  %v7484_v21 = vld [vmem:[#allocation22_spill] sm:$0xff] }
  0x5e   : > { %4988 = vmatprep.mubr.msk.f32.mxu1 %vm573_vm1, %v5975_v17  ;;  %5162 = vmatprep.mubr.msk.f32.mxu0 %vm573_vm1, %v6274_v42  ;;  %v7477_v42 = vld [vmem:[#allocation29_spill] sm:$0xff]  ;;  %v1208_v16 = vrot.slane %v7484_v21, 2 }
  0x5f   : > { %5034 = vmatpush3.msk.msra.mxu1 %vm638_vm0, %v6140_v5  ;;  %v4130_v5 = vadd.f32 -0.5, %v327_v11  ;;  %v6462_v11 = vmul.f32 2.0, %v4132_v10  ;;  %v1165_v10 = vrot.slane %v5975_v17, 2 }
  0x60   : > { %5543 = vmatprep.subr.msk.mxu1 %vm638_vm0, %v5937_v0 }
  0x61   : > { %4989 = vmatmul.mubr.msk.f32.gmra.mrb[2].mxu1 %vm573_vm1, %v5977_v18  ;;  %5163 = vmatmul.mubr.msk.f32.gmra.mrb[18].mxu0 %vm573_vm1, %v6290_v47  ;;  %v1191_v47 = vrot.slane %v6114_v44, 2 }
  0x62   : > { %4991 = vmatprep.mubr.msk.f32.mxu1 %vm573_vm1, %v5990_v28  ;;  %5165 = vmatprep.mubr.msk.f32.mxu0 %vm573_vm1, %v6306_v36  ;;  %v6452_v36 = vmul.f32 2.0, %v4131_v40  ;;  %v1838_v40 = vrot.slane %v6462_v11, 1 }
  0x65   : > { %4992 = vmatmul.mubr.msk.f32.gmra.mrb[4].mxu1 %vm573_vm1, %v6003_v34  ;;  %5166 = vmatmul.mubr.msk.f32.gmra.mrb[20].mxu0 %vm573_vm1, %v6316_v14  ;;  %v6450_v14 = vmul.f32 2.0, %v4130_v5  ;;  %v1836_v5 = vrot.slane %v6452_v36, 1 }
  0x66   : > { %4994 = vmatprep.mubr.msk.f32.mxu1 %vm573_vm1, %v6025_v48  ;;  %5168 = vmatprep.mubr.msk.f32.mxu0 %vm573_vm1, %v6325_v59  ;;  %v1190_v59 = vrot.slane %v6099_v32, 2 }
  0x67   : > { %v1835_v27 = vrot.slane %v6450_v14, 1 }
  0x69   : > { %4995 = vmatmul.mubr.msk.f32.gmra.mrb[6].mxu1 %vm573_vm1, %v6031_v50  ;;  %5169 = vmatmul.mubr.msk.f32.gmra.mrb[22].mxu0 %vm573_vm1, %v6340_v4  ;;  %v6476_v46 = vsel %vm490_vm2, %v1835_v27, %v1836_v5  ;;  %v6490_v27 = vsel %vm490_vm2, %v1836_v5, %v1838_v40  ;;  %v1173_v5 = vrot.slane %v6046_v60, 2  ;;  %v7475_v4 = vld [vmem:[#allocation28_spill] sm:$0xff] }
  0x6a   : > { %4997 = vmatprep.mubr.msk.f32.mxu1 %vm573_vm1, %v6048_v61  ;;  %5171 = vmatprep.mubr.msk.f32.mxu0 %vm573_vm1, %v6347_v3  ;;  %7471 = vst [vmem:[#allocation47_spill] sm:$0xff] %v6476_v46  ;;  %7472 = vst [vmem:[#allocation48_spill] sm:$0xff] %v6490_v27  ;;  %v1186_v3 = vrot.slane %v6091_v25, 2 }
  0x6d   : > { %4998 = vmatmul.mubr.msk.f32.gmra.mrb[8].mxu1 %vm573_vm1, %v6061_v6  ;;  %5172 = vmatmul.mubr.msk.f32.gmra.mrb[24].mxu0 %vm573_vm1, %v6365_v24  ;;  %v7473_v24 = vld [vmem:[#allocation19_spill] sm:$0xff] }
  0x6e   : > { %5000 = vmatprep.mubr.msk.f32.mxu1 %vm573_vm1, %v6069_v9  ;;  %5174 = vmatprep.mubr.msk.f32.mxu0 %vm573_vm1, %v6373_v1  ;;  %v1166_v1 = vrot.slane %v5977_v18, 2  ;;  %v1170_v18 = vrot.slane %v5990_v28, 2  ;;  %v1206_v51 = vrot.slane %v7473_v24, 2 }
  0x70   : > { %v6493_v17 = vsel %vm1159_vm3, %v1165_v10, %v1166_v1  ;;  %v1175_v10 = vrot.slane %v6025_v48, 2  ;;  %v6642_v39 = vsel %vm1159_vm3, %v1205_v57, %v1206_v51  ;;  %v6655_v57 = vsel %vm1159_vm3, %v1206_v51, %v1208_v16 }
  0x71   : > { %5001 = vmatmul.mubr.msk.f32.gmra.mrb[10].mxu1 %vm573_vm1, %v6091_v25  ;;  %5175 = vmatmul.mubr.msk.f32.gmra.mrb[26].mxu0 %vm573_vm1, %v6384_v8  ;;  %v1168_v8 = vrot.slane %v6011_v37, 2  ;;  %v1220_v16 = vrot.slane %v6269_v55, 2 }
  0x72   : > { %5003 = vmatprep.mubr.msk.f32.mxu1 %vm573_vm1, %v6099_v32  ;;  %5177 = vmatprep.mubr.msk.f32.mxu0 %vm573_vm1, %v6390_v15  ;;  %v1171_v15 = vrot.slane %v6003_v34, 2 }
  0x73   : > { %v6506_v37 = vsel %vm1159_vm3, %v1166_v1, %v1168_v8  ;;  %v6521_v1 = vld [vmem:[%s7364_s1 + $0x1c] sm:$0x7]  ;;  %v1178_v8 = vrot.slane %v6054_v2, 2 }
  0x74   : > { %v6510_v40 = vsel %vm1159_vm3, %v1170_v18, %v1171_v15  ;;  %v6528_v60 = vsel %vm1159_vm3, %v1171_v15, %v1173_v5  ;;  %v7474_v15 = vld [vmem:[#allocation4_spill] sm:$0xff] }
  0x75   : > { %5004 = vmatmul.mubr.msk.f32.gmra.mrb[12].mxu1 %vm573_vm1, %v6114_v44  ;;  %5178 = vmatmul.mubr.msk.f32.gmra.mrb[28].mxu0 %vm573_vm1, %v6399_v45  ;;  %v1181_v45 = vrot.slane %v6061_v6, 2 }
  0x76   : > { %5006 = vmatprep.mubr.msk.f32.mxu1 %vm573_vm1, %v6127_v53  ;;  %5180 = vmatprep.mubr.msk.f32.mxu0 %vm573_vm1, %v6476_v46  ;;  %v1176_v46 = vrot.slane %v6031_v50, 2 }
  0x78   : > { %v6532_v18 = vsel %vm1159_vm3, %v1175_v10, %v1176_v46  ;;  %v6549_v2 = vsel %vm1159_vm3, %v1176_v46, %v1178_v8  ;;  %v1185_v10 = vrot.slane %v6069_v9, 2 }
  0x79   : > { %5007 = vmatmul.mubr.msk.f32.gmra.mrb[14].mxu1 %vm573_vm1, %v6146_v7  ;;  %5181 = vmatmul.mubr.msk.f32.gmra.mrb[30].mxu0 %vm573_vm1, %v6490_v27  ;;  %v1180_v27 = vrot.slane %v6048_v61, 2 }
  0x7a   : > { %5009 = vmatprep.mubr.msk.f32.mxu1 %vm573_vm1, %v6158_v12  ;;  %5185 = vmatprep.mubr.msk.f32.mxu0 %vm573_vm1, %v6493_v17 }
  0x7b   : > { %v6553_v5 = vsel %vm1159_vm3, %v1180_v27, %v1181_v45  ;;  %v7476_v27 = vld [vmem:[#allocation9_spill] sm:$0xff] }
  0x7c   : > { %v1188_v8 = vrot.slane %v7476_v27, 2  ;;  %v6587_v27 = vsel %vm1159_vm3, %v1190_v59, %v1191_v47  ;;  %v7481_v59 = vld [vmem:[#allocation13_spill] sm:$0xff] }
  0x7d   : > { %5010 = vmatmul.mubr.msk.f32.gmra.mrb[16].mxu1 %vm573_vm1, %v6168_v30  ;;  %5186 = vmatmul.mubr.msk.f32.vlgmr.msra.gmra.mrb[0].mxu0 %vm573_vm1, %v6506_v37 }
  0x7e   : > { %5012 = vmatprep.mubr.msk.f32.mxu1 %vm573_vm1, %v6185_v43  ;;  %5188 = vmatprep.mubr.msk.f32.mxu0 %vm573_vm1, %v6510_v40 }
  0x7f   : > { %5234 = vmatpush3.msk.msra.mxu0 %vm638_vm0, %v6260_v22  ;;  %v1183_v22 = vrot.slane %v7474_v15, 2  ;;  %v6570_v15 = vsel %vm1159_vm3, %v1185_v10, %v1186_v3 }
  0x80   : > { %5283 = vmatprep.subr.msk.mxu0 %vm638_vm0, %v6521_v1 }
  0x81   : > { %5013 = vmatmul.mubr.msk.f32.gmra.mrb[18].mxu1 %vm573_vm1, %v7473_v24  ;;  %5189 = vmatmul.mubr.msk.f32.gmra.mrb[2].mxu0 %vm573_vm1, %v6528_v60  ;;  %v6566_v46 = vsel %vm1159_vm3, %v1181_v45, %v1183_v22  ;;  %v6583_v45 = vsel %vm1159_vm3, %v1186_v3, %v1188_v8  ;;  %v7478_v22 = vld [vmem:[#allocation10_spill] sm:$0xff]  ;;  %v1198_v8 = vrot.slane %v7481_v59, 2  ;;  %v1160_v59 = vrot.slane %v5979_v19, 2 }
  0x82   : > { %5015 = vmatprep.mubr.msk.f32.mxu1 %vm573_vm1, %v6218_v35  ;;  %5191 = vmatprep.mubr.msk.f32.mxu0 %vm573_vm1, %v6532_v18  ;;  %v1193_v10 = vrot.slane %v7478_v22, 2  ;;  %v6604_v22 = vsel %vm1159_vm3, %v1195_v26, %v1196_v41  ;;  %v7482_v26 = vld [vmem:[#allocation17_spill] sm:$0xff]  ;;  %v1210_v24 = vrot.slane %v6218_v35, 2  ;;  %v1216_v35 = vrot.slane %v7477_v42, 2 }
  0x84   : > { %v6600_v3 = vsel %vm1159_vm3, %v1191_v47, %v1193_v10  ;;  %v6617_v47 = vsel %vm1159_vm3, %v1196_v41, %v1198_v8  ;;  %v1203_v10 = vrot.slane %v7482_v26, 2  ;;  %v7483_v41 = vld [vmem:[#allocation2_spill] sm:$0xff]  ;;  %v1162_v26 = vsel %vm1159_vm3, %v1160_v59, %v1161_v20 }
  0x85   : > { %5016 = vmatmul.mubr.msk.f32.gmra.mrb[20].mxu1 %vm573_vm1, %v6220_v52  ;;  %5192 = vmatmul.mubr.msk.f32.gmra.mrb[4].mxu0 %vm573_vm1, %v6549_v2  ;;  %v1163_v8 = vrot.slane %v7483_v41, 2  ;;  %v1211_v41 = vrot.slane %v6220_v52, 2  ;;  %v1215_v52 = vrot.slane %v7475_v4, 2 }
  0x86   : > { %5018 = vmatprep.mubr.msk.f32.mxu1 %vm573_vm1, %v7475_v4  ;;  %5194 = vmatprep.mubr.msk.f32.mxu0 %vm573_vm1, %v6553_v5  ;;  %v6637_v19 = vsel %vm1159_vm3, %v1201_v54, %v1203_v10  ;;  %v7485_v10 = vld [vmem:[#allocation26_spill] sm:$0xff] }
  0x87   : > { %v1164_v54 = vsel %vm1159_vm3, %v1161_v20, %v1163_v8  ;;  %v1213_v59 = vrot.slane %v7485_v10, 2  ;;  %v6659_v21 = vsel %vm1159_vm3, %v1210_v24, %v1211_v41  ;;  %v7486_v20 = vld [vmem:[#allocation30_spill] sm:$0xff]  ;;  %v6675_v8 = vsel %vm1159_vm3, %v1215_v52, %v1216_v35 }
  0x88   : > { %v1218_v24 = vrot.slane %v7486_v20, 2  ;;  %v1228_v10 = vrot.slane %v6328_v63, 2  ;;  %v1230_v20 = vrot.slane %v6330_v49, 2 }
  0x89   : > { %5019 = vmatmul.mubr.msk.f32.gmra.mrb[22].mxu1 %vm573_vm1, %v7477_v42  ;;  %5195 = vmatmul.mubr.msk.f32.gmra.mrb[6].mxu0 %vm573_vm1, %v6566_v46  ;;  %v6671_v51 = vsel %vm1159_vm3, %v1211_v41, %v1213_v59 }
  0x8a   : > { %5021 = vmatprep.mubr.msk.f32.mxu1 %vm573_vm1, %v6269_v55  ;;  %5197 = vmatprep.mubr.msk.f32.mxu0 %vm573_vm1, %v6570_v15  ;;  %v6690_v52 = vsel %vm1159_vm3, %v1216_v35, %v1218_v24  ;;  %v1231_v24 = vrot.slane %v6332_v58, 2 }
  0x8d   : > { %5022 = vmatmul.mubr.msk.f32.gmra.mrb[24].mxu1 %vm573_vm1, %v7479_v62  ;;  %5198 = vmatmul.mubr.msk.f32.gmra.mrb[8].mxu0 %vm573_vm1, %v6583_v45 }
  0x8e   : > { %5024 = vmatprep.mubr.msk.f32.mxu1 %vm573_vm1, %v7480_v23  ;;  %5200 = vmatprep.mubr.msk.f32.mxu0 %vm573_vm1, %v6587_v27 }
  0x91   : > { %5025 = vmatmul.mubr.msk.f32.gmra.mrb[26].mxu1 %vm573_vm1, %v6303_v56  ;;  %5201 = vmatmul.mubr.msk.f32.gmra.mrb[10].mxu0 %vm573_vm1, %v6600_v3 }
  0x92   : > { %5027 = vmatprep.mubr.msk.f32.mxu1 %vm573_vm1, %v6330_v49  ;;  %5203 = vmatprep.mubr.msk.f32.mxu0 %vm573_vm1, %v6604_v22 }
  0x95   : > { %5028 = vmatmul.mubr.msk.f32.gmra.mrb[28].mxu1 %vm573_vm1, %v6332_v58  ;;  %5204 = vmatmul.mubr.msk.f32.gmra.mrb[12].mxu0 %vm573_vm1, %v6617_v47 }
  0x96   : > { %5030 = vmatprep.mubr.msk.f32.mxu1 %vm573_vm1, %v6354_v13  ;;  %5206 = vmatprep.mubr.msk.f32.mxu0 %vm573_vm1, %v6622_v38 }
  0x99   : > { %5031 = vmatmul.mubr.msk.f32.gmra.mrb[30].mxu1 %vm573_vm1, %v6356_v29  ;;  %5207 = vmatmul.mubr.msk.f32.gmra.mrb[14].mxu0 %vm573_vm1, %v6637_v19 }
  0x9a   : > { %5035 = vmatprep.mubr.msk.f32.mxu1 %vm573_vm1, %v1162_v26  ;;  %5209 = vmatprep.mubr.msk.f32.mxu0 %vm573_vm1, %v6642_v39  ;;  %v1221_v26 = vrot.slane %v7479_v62, 2 }
  0x9d   : > { %5036 = vmatmul.mubr.msk.f32.vlgmr.msra.gmra.mrb[0].mxu1 %vm573_vm1, %v1164_v54  ;;  %5210 = vmatmul.mubr.msk.f32.gmra.mrb[16].mxu0 %vm573_vm1, %v6655_v57  ;;  %v6694_v54 = vsel %vm1159_vm3, %v1220_v16, %v1221_v26  ;;  %v1233_v16 = vrot.slane %v6350_v33, 2 }
  0x9e   : > { %5038 = vmatprep.mubr.msk.f32.mxu1 %vm573_vm1, %v6493_v17  ;;  %5212 = vmatprep.mubr.msk.f32.mxu0 %vm573_vm1, %v6659_v21  ;;  %v7487_v17 = vld [vmem:[#allocation35_spill] sm:$0xff] }
  0x9f   : > { %5544 = vmatpush3.msk.msra.mxu1 %vm638_vm0, %v5937_v0  ;;  %v1223_v41 = vrot.slane %v7487_v17, 2  ;;  %v1225_v0 = vrot.slane %v7480_v23, 2  ;;  %v1235_v17 = vrot.slane %v6354_v13, 2  ;;  %v6741_v33 = vsel %vm1159_vm3, %v1231_v24, %v1233_v16 }
  0xa1   : > { %5039 = vmatmul.mubr.msk.f32.gmra.mrb[2].mxu1 %vm573_vm1, %v6506_v37  ;;  %5213 = vmatmul.mubr.msk.f32.gmra.mrb[18].mxu0 %vm573_vm1, %v6671_v51  ;;  %v1226_v37 = vrot.slane %v6303_v56, 2  ;;  %v6707_v35 = vsel %vm1159_vm3, %v1221_v26, %v1223_v41  ;;  %v6728_v26 = vsel %vm1159_vm3, %v1230_v20, %v1231_v24  ;;  %v1236_v41 = vrot.slane %v6356_v29, 2 }
  0xa2   : > { %5041 = vmatprep.mubr.msk.f32.mxu1 %vm573_vm1, %v6510_v40  ;;  %5215 = vmatprep.mubr.msk.f32.mxu0 %vm573_vm1, %v6675_v8  ;;  %v2107_v20 = vrot.slane %v6452_v36, 2  ;;  %v2109_v24 = vrot.slane %v6462_v11, 2  ;;  %v6790_v11 = vld [vmem:[%s7364_s1 + $0x20] sm:$0x7] }
  0xa3   : > { %v6711_v59 = vsel %vm1159_vm3, %v1225_v0, %v1226_v37  ;;  %v6724_v63 = vsel %vm1159_vm3, %v1226_v37, %v1228_v10  ;;  %v1238_v0 = vrot.slane %v6370_v31, 2  ;;  %v6745_v37 = vsel %vm1159_vm3, %v1235_v17, %v1236_v41 }
  0xa4   : > { %v2106_v10 = vrot.slane %v6450_v14, 2  ;;  %v6773_v17 = vsel %vm1159_vm3, %v2107_v20, %v2109_v24  ;;  %v332_v24 = vld [vmem:[%s5965_s14 + $0x1a8] sm:$0x3] }
  0xa5   : > { %5042 = vmatmul.mubr.msk.f32.gmra.mrb[4].mxu1 %vm573_vm1, %v6528_v60  ;;  %5216 = vmatmul.mubr.msk.f32.gmra.mrb[20].mxu0 %vm573_vm1, %v6690_v52  ;;  %v6758_v31 = vsel %vm1159_vm3, %v1236_v41, %v1238_v0  ;;  %v7510_v41 = vld [vmem:[#allocation38_spill] sm:$0xff]  ;;  %v7511_v0 = vld [vmem:[#allocation39_spill] sm:$0xff] }
  0xa6   : > { %5044 = vmatprep.mubr.msk.f32.mxu1 %vm573_vm1, %v6532_v18  ;;  %5218 = vmatprep.mubr.msk.f32.mxu0 %vm573_vm1, %v6694_v54  ;;  %v6762_v16 = vsel %vm1159_vm3, %v2106_v10, %v2107_v20  ;;  %v7512_v10 = vld [vmem:[#allocation40_spill] sm:$0xff]  ;;  %v7513_v20 = vld [vmem:[#allocation41_spill] sm:$0xff] }
  0xa9   : > { %5045 = vmatmul.mubr.msk.f32.gmra.mrb[6].mxu1 %vm573_vm1, %v6549_v2  ;;  %5219 = vmatmul.mubr.msk.f32.gmra.mrb[22].mxu0 %vm573_vm1, %v6707_v35 }
  0xaa   : > { %5047 = vmatprep.mubr.msk.f32.mxu1 %vm573_vm1, %v6553_v5  ;;  %5221 = vmatprep.mubr.msk.f32.mxu0 %vm573_vm1, %v6711_v59 }
  0xad   : > { %5048 = vmatmul.mubr.msk.f32.gmra.mrb[8].mxu1 %vm573_vm1, %v6566_v46  ;;  %5222 = vmatmul.mubr.msk.f32.gmra.mrb[24].mxu0 %vm573_vm1, %v6724_v63 }
  0xae   : > { %5050 = vmatprep.mubr.msk.f32.mxu1 %vm573_vm1, %v6570_v15  ;;  %5224 = vmatprep.mubr.msk.f32.mxu0 %vm573_vm1, %v6728_v26 }
  0xb1   : > { %5051 = vmatmul.mubr.msk.f32.gmra.mrb[10].mxu1 %vm573_vm1, %v6583_v45  ;;  %5225 = vmatmul.mubr.msk.f32.gmra.mrb[26].mxu0 %vm573_vm1, %v6741_v33 }
  0xb2   : > { %5053 = vmatprep.mubr.msk.f32.mxu1 %vm573_vm1, %v6587_v27  ;;  %5227 = vmatprep.mubr.msk.f32.mxu0 %vm573_vm1, %v6745_v37 }
  0xb5   : > { %5054 = vmatmul.mubr.msk.f32.gmra.mrb[12].mxu1 %vm573_vm1, %v6600_v3  ;;  %5228 = vmatmul.mubr.msk.f32.gmra.mrb[28].mxu0 %vm573_vm1, %v6758_v31 }
  0xb6   : > { %5056 = vmatprep.mubr.msk.f32.mxu1 %vm573_vm1, %v6604_v22  ;;  %5230 = vmatprep.mubr.msk.f32.mxu0 %vm573_vm1, %v6762_v16 }
  0xb9   : > { %5057 = vmatmul.mubr.msk.f32.gmra.mrb[14].mxu1 %vm573_vm1, %v6617_v47  ;;  %5231 = vmatmul.mubr.msk.f32.gmra.mrb[30].mxu0 %vm573_vm1, %v6773_v17 }
  0xba   : > { %5059 = vmatprep.mubr.msk.f32.mxu1 %vm573_vm1, %v6622_v38  ;;  %5235 = vmatprep.mubr.msk.f32.mxu0 %vm573_vm1, %v5990_v28  ;;  %v7488_v28 = vld [vmem:[#allocation19_spill] sm:$0xff] }
  0xbd   : > { %5060 = vmatmul.mubr.msk.f32.gmra.mrb[16].mxu1 %vm573_vm1, %v6637_v19  ;;  %5236 = vmatmul.mubr.msk.f32.vlgmr.msra.gmra.mrb[0].mxu0 %vm573_vm1, %v6003_v34  ;;  %v7489_v34 = vld [vmem:[#allocation23_spill] sm:$0xff] }
  0xbe   : > { %5062 = vmatprep.mubr.msk.f32.mxu1 %vm573_vm1, %v6642_v39  ;;  %5238 = vmatprep.mubr.msk.f32.mxu0 %vm573_vm1, %v6025_v48  ;;  %v7490_v48 = vld [vmem:[#allocation24_spill] sm:$0xff] }
  0xbf   : > { %5284 = vmatpush3.msk.msra.mxu0 %vm638_vm0, %v6521_v1  ;;  %v7509_v1 = vld [vmem:[#allocation37_spill] sm:$0xff] }
  0xc0   : > { %5333 = vmatprep.subr.msk.mxu0 %vm638_vm0, %v6790_v11 }
  0xc1   : > { %5063 = vmatmul.mubr.msk.f32.gmra.mrb[18].mxu1 %vm573_vm1, %v6655_v57  ;;  %5239 = vmatmul.mubr.msk.f32.gmra.mrb[2].mxu0 %vm573_vm1, %v6031_v50  ;;  %v330_v50 = vld [vmem:[%s5965_s14 + $0x198] sm:$0xff] }
  0xc2   : > { %5065 = vmatprep.mubr.msk.f32.mxu1 %vm573_vm1, %v6659_v21  ;;  %5241 = vmatprep.mubr.msk.f32.mxu0 %vm573_vm1, %v6048_v61  ;;  %v331_v61 = vld [vmem:[%s5965_s14 + $0x1a0] sm:$0xff] }
  0xc5   : > { %5066 = vmatmul.mubr.msk.f32.gmra.mrb[20].mxu1 %vm573_vm1, %v6671_v51  ;;  %5242 = vmatmul.mubr.msk.f32.gmra.mrb[4].mxu0 %vm573_vm1, %v6061_v6  ;;  %v4134_v6 = vadd.f32 -0.5, %v331_v61 }
  0xc6   : > { %5068 = vmatprep.mubr.msk.f32.mxu1 %vm573_vm1, %v6675_v8  ;;  %5244 = vmatprep.mubr.msk.f32.mxu0 %vm573_vm1, %v6069_v9 }
  0xc9   : > { %5069 = vmatmul.mubr.msk.f32.gmra.mrb[22].mxu1 %vm573_vm1, %v6690_v52  ;;  %5245 = vmatmul.mubr.msk.f32.gmra.mrb[6].mxu0 %vm573_vm1, %v6091_v25  ;;  %v6912_v25 = vmul.f32 2.0, %v4134_v6 }
  0xca   : > { %5071 = vmatprep.mubr.msk.f32.mxu1 %vm573_vm1, %v6694_v54  ;;  %5247 = vmatprep.mubr.msk.f32.mxu0 %vm573_vm1, %v6099_v32  ;;  %v7491_v32 = vld [vmem:[#allocation3_spill] sm:$0xff] }
  0xcb   : > { %v2647_v6 = vrot.slane %v6912_v25, 1 }
  0xcd   : > { %5072 = vmatmul.mubr.msk.f32.gmra.mrb[24].mxu1 %vm573_vm1, %v6707_v35  ;;  %5248 = vmatmul.mubr.msk.f32.gmra.mrb[8].mxu0 %vm573_vm1, %v6114_v44  ;;  %v7493_v44 = vld [vmem:[#allocation6_spill] sm:$0xff] }
  0xce   : > { %5074 = vmatprep.mubr.msk.f32.mxu1 %vm573_vm1, %v6711_v59  ;;  %5250 = vmatprep.mubr.msk.f32.mxu0 %vm573_vm1, %v6127_v53  ;;  %v7494_v53 = vld [vmem:[#allocation7_spill] sm:$0xff] }
  0xd1   : > { %5075 = vmatmul.mubr.msk.f32.gmra.mrb[26].mxu1 %vm573_vm1, %v6724_v63  ;;  %5251 = vmatmul.mubr.msk.f32.gmra.mrb[10].mxu0 %vm573_vm1, %v6146_v7  ;;  %v7495_v7 = vld [vmem:[#allocation8_spill] sm:$0xff] }
  0xd2   : > { %5077 = vmatprep.mubr.msk.f32.mxu1 %vm573_vm1, %v6728_v26  ;;  %5253 = vmatprep.mubr.msk.f32.mxu0 %vm573_vm1, %v6158_v12  ;;  %v7496_v12 = vld [vmem:[#allocation11_spill] sm:$0xff] }
  0xd5   : > { %5078 = vmatmul.mubr.msk.f32.gmra.mrb[28].mxu1 %vm573_vm1, %v6741_v33  ;;  %5254 = vmatmul.mubr.msk.f32.gmra.mrb[12].mxu0 %vm573_vm1, %v6168_v30  ;;  %v7497_v30 = vld [vmem:[#allocation12_spill] sm:$0xff] }
  0xd6   : > { %5080 = vmatprep.mubr.msk.f32.mxu1 %vm573_vm1, %v6745_v37  ;;  %5256 = vmatprep.mubr.msk.f32.mxu0 %vm573_vm1, %v6185_v43  ;;  %v7498_v43 = vld [vmem:[#allocation14_spill] sm:$0xff] }
  0xd9   : > { %5081 = vmatmul.mubr.msk.f32.gmra.mrb[30].mxu1 %vm573_vm1, %v6758_v31  ;;  %5257 = vmatmul.mubr.msk.f32.gmra.mrb[14].mxu0 %vm573_vm1, %v7488_v28  ;;  %v7515_v28 = vld [vmem:[#allocation43_spill] sm:$0xff] }
  0xda   : > { %5112 = vmatprep.mubr.msk.f32.mxu1 %vm573_vm1, %v7489_v34  ;;  %5259 = vmatprep.mubr.msk.f32.mxu0 %vm573_vm1, %v7489_v34  ;;  %v4135_v34 = vadd.f32 -0.5, %v332_v24 }
  0xdd   : > { %5113 = vmatmul.mubr.msk.f32.vlgmr.msra.gmra.mrb[18].mxu1 %vm573_vm1, %v7490_v48  ;;  %5260 = vmatmul.mubr.msk.f32.gmra.mrb[16].mxu0 %vm573_vm1, %v7490_v48  ;;  %v7516_v48 = vld [vmem:[#allocation44_spill] sm:$0xff] }
  0xde   : > { %5115 = vmatprep.mubr.msk.f32.mxu1 %vm573_vm1, %v7475_v4  ;;  %5262 = vmatprep.mubr.msk.f32.mxu0 %vm573_vm1, %v7475_v4  ;;  %v7506_v4 = vld [vmem:[#allocation31_spill] sm:$0xff] }
  0xe1   : > { %5116 = vmatmul.mubr.msk.f32.gmra.mrb[20].mxu1 %vm573_vm1, %v7477_v42  ;;  %5263 = vmatmul.mubr.msk.f32.gmra.mrb[18].mxu0 %vm573_vm1, %v7477_v42  ;;  %v7502_v42 = vld [vmem:[#allocation20_spill] sm:$0xff] }
  0xe2   : > { %5118 = vmatprep.mubr.msk.f32.mxu1 %vm573_vm1, %v6269_v55  ;;  %5265 = vmatprep.mubr.msk.f32.mxu0 %vm573_vm1, %v6269_v55  ;;  %v7501_v55 = vld [vmem:[#allocation18_spill] sm:$0xff] }
  0xe5   : > { %5119 = vmatmul.mubr.msk.f32.gmra.mrb[22].mxu1 %vm573_vm1, %v7479_v62  ;;  %5266 = vmatmul.mubr.msk.f32.gmra.mrb[20].mxu0 %vm573_vm1, %v7479_v62  ;;  %v7500_v62 = vld [vmem:[#allocation16_spill] sm:$0xff] }
  0xe6   : > { %5121 = vmatprep.mubr.msk.f32.mxu1 %vm573_vm1, %v7480_v23  ;;  %5268 = vmatprep.mubr.msk.f32.mxu0 %vm573_vm1, %v7480_v23  ;;  %v7499_v23 = vld [vmem:[#allocation15_spill] sm:$0xff] }
  0xe9   : > { %5122 = vmatmul.mubr.msk.f32.gmra.mrb[24].mxu1 %vm573_vm1, %v6303_v56  ;;  %5269 = vmatmul.mubr.msk.f32.gmra.mrb[22].mxu0 %vm573_vm1, %v6303_v56  ;;  %v4133_v56 = vadd.f32 -0.5, %v330_v50  ;;  %v7517_v50 = vld [vmem:[#allocation45_spill] sm:$0xff] }
  0xea   : > { %5124 = vmatprep.mubr.msk.f32.mxu1 %vm573_vm1, %v6330_v49  ;;  %5271 = vmatprep.mubr.msk.f32.mxu0 %vm573_vm1, %v6330_v49  ;;  %v7504_v49 = vld [vmem:[#allocation27_spill] sm:$0xff] }
  0xeb   : > { %v6906_v9 = vmul.f32 2.0, %v4133_v56  ;;  %v440_v56 = vmul.f32 2.0, %v4135_v34 }
  0xed   : > { %5125 = vmatmul.mubr.msk.f32.gmra.mrb[26].mxu1 %vm573_vm1, %v6332_v58  ;;  %5272 = vmatmul.mubr.msk.f32.gmra.mrb[24].mxu0 %vm573_vm1, %v6332_v58  ;;  %v7505_v58 = vld [vmem:[#allocation25_spill] sm:$0xff]  ;;  %v2646_v61 = vrot.slane %v6906_v9, 1 }
  0xee   : > { %5127 = vmatprep.mubr.msk.f32.mxu1 %vm573_vm1, %v6354_v13  ;;  %5274 = vmatprep.mubr.msk.f32.mxu0 %vm573_vm1, %v6354_v13  ;;  %v7507_v13 = vld [vmem:[#allocation33_spill] sm:$0xff] }
  0xf1   : > { %5128 = vmatmul.mubr.msk.f32.gmra.mrb[28].mxu1 %vm573_vm1, %v6356_v29  ;;  %5275 = vmatmul.mubr.msk.f32.gmra.mrb[26].mxu0 %vm573_vm1, %v6356_v29  ;;  %v7508_v29 = vld [vmem:[#allocation34_spill] sm:$0xff] }
  0xf2   : > { %5130 = vmatprep.mubr.msk.f32.mxu1 %vm573_vm1, %v6450_v14  ;;  %5277 = vmatprep.mubr.msk.f32.mxu0 %vm573_vm1, %v6450_v14  ;;  %v7492_v14 = vld [vmem:[#allocation5_spill] sm:$0xff] }
  0xf5   : > { %5131 = vmatmul.mubr.msk.f32.gmra.mrb[30].mxu1 %vm573_vm1, %v6452_v36  ;;  %5278 = vmatmul.mubr.msk.f32.gmra.mrb[28].mxu0 %vm573_vm1, %v6452_v36  ;;  %v7503_v36 = vld [vmem:[#allocation21_spill] sm:$0xff] }
  0xf6   : > { %5280 = vmatprep.mubr.msk.f32.mxu0 %vm573_vm1, %v6906_v9 }
  0xf9   : > { %5281 = vmatmul.mubr.msk.f32.gmra.mrb[30].mxu0 %vm573_vm1, %v6912_v25 }
  0xfa   : > { %5285 = vmatprep.mubr.msk.f32.mxu0 %vm573_vm1, %v7491_v32  ;;  %v7518_v32 = vld [vmem:[#allocation46_spill] sm:$0xff] }
  0xfd   : > { %5286 = vmatmul.mubr.msk.f32.vlgmr.msra.gmra.mrb[0].mxu0 %vm573_vm1, %v7492_v14  ;;  %v7519_v14 = vld [vmem:[#allocation47_spill] sm:$0xff] }
  0xfe   : > { %5288 = vmatprep.mubr.msk.f32.mxu0 %vm573_vm1, %v7493_v44  ;;  %5334 = vmatpush3.msk.msra.mxu0 %vm638_vm0, %v6790_v11  ;;  %v7514_v11 = vld [vmem:[#allocation42_spill] sm:$0xff]  ;;  %v2649_v44 = vrot.slane %v440_v56, 1 }
 0x101   : > { %5289 = vmatmul.mubr.msk.f32.gmra.mrb[2].mxu0 %vm573_vm1, %v7494_v53  ;;  %v2648_v53 = vsel %vm490_vm2, %v2646_v61, %v2647_v6 }
 0x102   : > { %5291 = vmatprep.mubr.msk.f32.mxu0 %vm573_vm1, %v7495_v7  ;;  %v7520_v7 = vld [vmem:[#allocation48_spill] sm:$0xff] }
 0x105   : > { %5292 = vmatmul.mubr.msk.f32.gmra.mrb[4].mxu0 %vm573_vm1, %v7496_v12  ;;  %v2650_v12 = vsel %vm490_vm2, %v2647_v6, %v2649_v44 }
 0x106   : > { %5294 = vmatprep.mubr.msk.f32.mxu0 %vm573_vm1, %v7497_v30 }
 0x109   : > { %5295 = vmatmul.mubr.msk.f32.gmra.mrb[6].mxu0 %vm573_vm1, %v7498_v43 }
 0x10a   : > { %5297 = vmatprep.mubr.msk.f32.mxu0 %vm573_vm1, %v7499_v23 }
 0x10d   : > { %5298 = vmatmul.mubr.msk.f32.gmra.mrb[8].mxu0 %vm573_vm1, %v7500_v62 }
 0x10e   : > { %5300 = vmatprep.mubr.msk.f32.mxu0 %vm573_vm1, %v7501_v55 }
 0x111   : > { %5301 = vmatmul.mubr.msk.f32.gmra.mrb[10].mxu0 %vm573_vm1, %v7502_v42 }
 0x112   : > { %5303 = vmatprep.mubr.msk.f32.mxu0 %vm573_vm1, %v7503_v36 }
 0x115   : > { %5304 = vmatmul.mubr.msk.f32.gmra.mrb[12].mxu0 %vm573_vm1, %v7504_v49 }
 0x116   : > { %5306 = vmatprep.mubr.msk.f32.mxu0 %vm573_vm1, %v7505_v58 }
 0x119   : > { %5307 = vmatmul.mubr.msk.f32.gmra.mrb[14].mxu0 %vm573_vm1, %v7506_v4 }
 0x11a   : > { %5309 = vmatprep.mubr.msk.f32.mxu0 %vm573_vm1, %v7507_v13 }
 0x11d   : > { %5310 = vmatmul.mubr.msk.f32.gmra.mrb[16].mxu0 %vm573_vm1, %v7508_v29 }
 0x11e   : > { %5312 = vmatprep.mubr.msk.f32.mxu0 %vm573_vm1, %v7509_v1  ;;  %v7120_v1 = vld [vmem:[%s7365_s2] ss:$0 sm:$0xff] }
 0x121   : > { %5313 = vmatmul.mubr.msk.f32.gmra.mrb[18].mxu0 %vm573_vm1, %v7510_v41 }
 0x122   : > { %5315 = vmatprep.mubr.msk.f32.mxu0 %vm573_vm1, %v7511_v0 }
 0x125   : > { %5316 = vmatmul.mubr.msk.f32.gmra.mrb[20].mxu0 %vm573_vm1, %v7512_v10 }
 0x126   : > { %5318 = vmatprep.mubr.msk.f32.mxu0 %vm573_vm1, %v7513_v20 }
 0x129   : > { %5319 = vmatmul.mubr.msk.f32.gmra.mrb[22].mxu0 %vm573_vm1, %v7514_v11 }
 0x12a   : > { %5321 = vmatprep.mubr.msk.f32.mxu0 %vm573_vm1, %v7515_v28 }
 0x12d   : > { %5322 = vmatmul.mubr.msk.f32.gmra.mrb[24].mxu0 %vm573_vm1, %v7516_v48 }
 0x12e   : > { %5324 = vmatprep.mubr.msk.f32.mxu0 %vm573_vm1, %v7517_v50 }
 0x131   : > { %5325 = vmatmul.mubr.msk.f32.gmra.mrb[26].mxu0 %vm573_vm1, %v7518_v32 }
 0x132   : > { %5327 = vmatprep.mubr.msk.f32.mxu0 %vm573_vm1, %v7519_v14 }
 0x135   : > { %5328 = vmatmul.mubr.msk.f32.gmra.mrb[28].mxu0 %vm573_vm1, %v7520_v7 }
 0x136   : > { %5330 = vmatprep.mubr.msk.f32.mxu0 %vm573_vm1, %v2648_v53 }
 0x139   : > { %5331 = vmatmul.mubr.msk.f32.gmra.mrb[30].mxu0 %vm573_vm1, %v2650_v12 }
 0x13a   : > { %5335 = vmatprep.mubr.msk.f32.mxu0 %vm573_vm1, %v6510_v40 }
 0x13d   : > { %5336 = vmatmul.mubr.msk.f32.vlgmr.msra.gmra.mrb[0].mxu0 %vm573_vm1, %v6528_v60 }
 0x13e   : > { %5338 = vmatprep.mubr.msk.f32.mxu0 %vm573_vm1, %v6532_v18  ;;  %v2920_v18 = vrot.slane %v440_v56, 2 }
 0x141   : > { %5339 = vmatmul.mubr.msk.f32.gmra.mrb[2].mxu0 %vm573_vm1, %v6549_v2 }
 0x142   : > { %5341 = vmatprep.mubr.msk.f32.mxu0 %vm573_vm1, %v6553_v5 }
 0x145   : > { %5342 = vmatmul.mubr.msk.f32.gmra.mrb[4].mxu0 %vm573_vm1, %v6566_v46 }
 0x146   : > { %5344 = vmatprep.mubr.msk.f32.mxu0 %vm573_vm1, %v6570_v15 }
 0x149   : > { %5345 = vmatmul.mubr.msk.f32.gmra.mrb[6].mxu0 %vm573_vm1, %v6583_v45 }
 0x14a   : > { %5347 = vmatprep.mubr.msk.f32.mxu0 %vm573_vm1, %v6587_v27 }
 0x14d   : > { %5348 = vmatmul.mubr.msk.f32.gmra.mrb[8].mxu0 %vm573_vm1, %v6600_v3 }
 0x14e   : > { %5350 = vmatprep.mubr.msk.f32.mxu0 %vm573_vm1, %v6604_v22 }
 0x151   : > { %5351 = vmatmul.mubr.msk.f32.gmra.mrb[10].mxu0 %vm573_vm1, %v6617_v47 }
 0x152   : > { %5353 = vmatprep.mubr.msk.f32.mxu0 %vm573_vm1, %v6622_v38  ;;  %v2918_v38 = vrot.slane %v6912_v25, 2 }
 0x154   : > { %v2921_v15 = vsel %vm1159_vm3, %v2918_v38, %v2920_v18 }
 0x155   : > { %5354 = vmatmul.mubr.msk.f32.gmra.mrb[12].mxu0 %vm573_vm1, %v6637_v19 }
 0x156   : > { %5356 = vmatprep.mubr.msk.f32.mxu0 %vm573_vm1, %v6642_v39  ;;  %v2917_v39 = vrot.slane %v6906_v9, 2 }
 0x158   : > { %v2919_v2 = vsel %vm1159_vm3, %v2917_v39, %v2918_v38 }
 0x159   : > { %5357 = vmatmul.mubr.msk.f32.gmra.mrb[14].mxu0 %vm573_vm1, %v6655_v57 }
 0x15a   : > { %5359 = vmatprep.mubr.msk.f32.mxu0 %vm573_vm1, %v6659_v21 }
 0x15d   : > { %5360 = vmatmul.mubr.msk.f32.gmra.mrb[16].mxu0 %vm573_vm1, %v6671_v51 }
 0x15e   : > { %5362 = vmatprep.mubr.msk.f32.mxu0 %vm573_vm1, %v6675_v8 }
 0x161   : > { %5363 = vmatmul.mubr.msk.f32.gmra.mrb[18].mxu0 %vm573_vm1, %v6690_v52 }
 0x162   : > { %5365 = vmatprep.mubr.msk.f32.mxu0 %vm573_vm1, %v6694_v54 }
 0x165   : > { %5366 = vmatmul.mubr.msk.f32.gmra.mrb[20].mxu0 %vm573_vm1, %v6707_v35  ;;  %v3259_v35 = vld [vmem:[%s7366_s3] sm:$0xff] }
 0x166   : > { %5368 = vmatprep.mubr.msk.f32.mxu0 %vm573_vm1, %v6711_v59  ;;  %v3260_v59 = vld [vmem:[%s7366_s3 + $0x8] sm:$0xff] }
 0x169   : > { %5369 = vmatmul.mubr.msk.f32.gmra.mrb[22].mxu0 %vm573_vm1, %v6724_v63 }
 0x16a   : > { %5371 = vmatprep.mubr.msk.f32.mxu0 %vm573_vm1, %v6728_v26  ;;  %v5439_v26 = vpack.c.bf16 %v3260_v59, %v3259_v35 }
 0x16c   : > { %5440 = vmatprep.subr.bf16.mxu1 %v5439_v26 }
 0x16d   : > { %5372 = vmatmul.mubr.msk.f32.gmra.mrb[24].mxu0 %vm573_vm1, %v6741_v33  ;;  %5442 = vmatpush3.bf16.msra.mxu1 %v5439_v26 }
 0x16e   : > { %5374 = vmatprep.mubr.msk.f32.mxu0 %vm573_vm1, %v6745_v37  ;;  %v3261_v37 = vld [vmem:[%s7366_s3 + $0x10] sm:$0xff] }
 0x170   : > { %v5037_v40 = vpop.f32.mrb[0].mxu1 }
 0x171   : > { %5375 = vmatmul.mubr.msk.f32.gmra.mrb[26].mxu0 %vm573_vm1, %v6758_v31  ;;  %v1375_v60 = vpop.f32.mrb[1].mxu1  ;;  %v3262_v31 = vld [vmem:[%s7366_s3 + $0x18] sm:$0xff] }
 0x172   : > { %5377 = vmatprep.mubr.msk.f32.mxu0 %vm573_vm1, %v6762_v16  ;;  %v5443_v16 = vpack.c.bf16 %v3262_v31, %v3261_v37 }
 0x174   : > { %v5040_v5 = vpop.f32.mrb[2].mxu1  ;;  %5444 = vmatprep.subr.bf16.mxu1 %v5443_v16 }
 0x175   : > { %5378 = vmatmul.mubr.msk.f32.gmra.mrb[28].mxu0 %vm573_vm1, %v6773_v17  ;;  %v1385_v46 = vpop.f32.mrb[3].mxu1  ;;  %5446 = vmatpush3.bf16.msra.mxu1 %v5443_v16 }
 0x176   : > { %5380 = vmatprep.mubr.msk.f32.mxu0 %vm573_vm1, %v2919_v2 }
 0x178   : > { %v5043_v45 = vpop.f32.mrb[4].mxu1 }
 0x179   : > { %5381 = vmatmul.mubr.msk.f32.gmra.mrb[30].mxu0 %vm573_vm1, %v2921_v15  ;;  %v1395_v27 = vpop.f32.mrb[5].mxu1 }
 0x17c   : > { %v7053_v3 = vpop.f32.mrb[6].mxu1 }
 0x17d   : > { %v7055_v22 = vpop.f32.mrb[7].mxu1 }
 0x180   : > { %v7057_v47 = vpop.f32.mrb[8].mxu1 }
 0x181   : > { %v7059_v19 = vpop.f32.mrb[9].mxu1 }
 0x184   : > { %v7061_v57 = vpop.f32.mrb[10].mxu1 }
 0x185   : > { %v7063_v21 = vpop.f32.mrb[11].mxu1 }
 0x188   : > { %v7065_v51 = vpop.f32.mrb[12].mxu1 }
 0x189   : > { %v7067_v8 = vpop.f32.mrb[13].mxu1 }
 0x18c   : > { %v7069_v52 = vpop.f32.mrb[14].mxu1 }
 0x18d   : > { %v7071_v54 = vpop.f32.mrb[15].mxu1 }
 0x190   : > { %v7079_v63 = vpop.f32.mrb[16].mxu1 }
 0x191   : > { %v7081_v33 = vpop.f32.mrb[17].mxu1 }
 0x1b0   : > { %v7089_v17 = vpop.f32.mrb[18].mxu1 }
 0x1b1   : > { %v7091_v9 = vpop.f32.mrb[19].mxu1 }
 0x1b4   : > { %v7093_v25 = vpop.f32.mrb[20].mxu1 }
 0x1b5   : > { %v7095_v30 = vpop.f32.mrb[21].mxu1 }
 0x1b8   : > { %v7097_v43 = vpop.f32.mrb[22].mxu1 }
 0x1b9   : > { %v7099_v23 = vpop.f32.mrb[23].mxu1 }
 0x1bc   : > { %v7101_v62 = vpop.f32.mrb[24].mxu1 }
 0x1bd   : > { %v7103_v55 = vpop.f32.mrb[25].mxu1 }
 0x1c0   : > { %v7105_v42 = vpop.f32.mrb[26].mxu1 }
 0x1c1   : > { %v7107_v36 = vpop.f32.mrb[27].mxu1 }
 0x1c4   : > { %v7109_v49 = vpop.f32.mrb[28].mxu1 }
 0x1c5   : > { %v7111_v58 = vpop.f32.mrb[29].mxu1 }
 0x1c8   : > { %v7113_v4 = vpop.f32.mrb[30].mxu1 }
 0x1c9   : > { %v7115_v13 = vpop.f32.mrb[31].mxu1 }
 0x210   : > { %v5337_v29 = vpop.f32.mrb[0].mxu0 }
 0x211   : > { %v5545_v41 = vadd.f32 %v5337_v29, %v5037_v40  ;;  %v2997_v0 = vpop.f32.mrb[1].mxu0 }
 0x212   : > { %v5546_v10 = vadd.f32 %v2997_v0, %v1375_v60 }
 0x213   : > { %v3196_v20 = vadd.f32 %v5545_v41, %v7120_v1 }
 0x214   : > { %v3195_v24 = vadd.f32 %v5546_v10, %v7120_v1  ;;  %v5340_v11 = vpop.f32.mrb[2].mxu0 }
 0x215   : > { %v5547_v28 = vadd.f32 %v5340_v11, %v5040_v5  ;;  %v3007_v34 = vpop.f32.mrb[3].mxu0  ;;  %v3228_v56 = vmax.f32 %v3196_v20, 0.0 }
 0x216   : > { %v3227_v48 = vmax.f32 %v3195_v24, 0.0  ;;  %v5548_v50 = vadd.f32 %v3007_v34, %v1385_v46 }
 0x217   : > { %v3198_v61 = vadd.f32 %v5547_v28, %v7120_v1 }
 0x218   : > { %v3197_v6 = vadd.f32 %v5548_v50, %v7120_v1  ;;  %v5343_v32 = vpop.f32.mrb[4].mxu0  ;;  %5391 = vmatprep.mubr.msk.f32.mxu1 %vm3270_vm4, %v3227_v48 }
 0x219   : > { %v5549_v14 = vadd.f32 %v5343_v32, %v5043_v45  ;;  %v3017_v44 = vpop.f32.mrb[5].mxu0  ;;  %5392 = vmatmul.mubr.msk.f32.vlgmr.msra.gmra.mrb[32].mxu1 %vm3270_vm4, %v3228_v56  ;;  %v3230_v12 = vmax.f32 %v3198_v61, 0.0 }
 0x21a   : > { %v3229_v53 = vmax.f32 %v3197_v6, 0.0  ;;  %v5550_v7 = vadd.f32 %v3017_v44, %v1395_v27 }
 0x21b   : > { %v3200_v39 = vadd.f32 %v5549_v14, %v7120_v1 }
 0x21c   : > { %v3199_v38 = vadd.f32 %v5550_v7, %v7120_v1  ;;  %v5346_v40 = vpop.f32.mrb[6].mxu0  ;;  %5394 = vmatprep.mubr.msk.f32.mxu1 %vm3270_vm4, %v3229_v53 }
 0x21d   : > { %v5551_v60 = vadd.f32 %v5346_v40, %v7053_v3  ;;  %v3027_v18 = vpop.f32.mrb[7].mxu0  ;;  %5395 = vmatmul.mubr.msk.f32.gmra.mrb[34].mxu1 %vm3270_vm4, %v3230_v12  ;;  %v3232_v46 = vmax.f32 %v3200_v39, 0.0 }
 0x21e   : > { %v3231_v2 = vmax.f32 %v3199_v38, 0.0  ;;  %v5552_v5 = vadd.f32 %v3027_v18, %v7055_v22 }
 0x21f   : > { %v3202_v15 = vadd.f32 %v5551_v60, %v7120_v1 }
 0x220   : > { %v3201_v45 = vadd.f32 %v5552_v5, %v7120_v1  ;;  %v5349_v27 = vpop.f32.mrb[8].mxu0  ;;  %5397 = vmatprep.mubr.msk.f32.mxu1 %vm3270_vm4, %v3231_v2 }
 0x221   : > { %v5553_v35 = vadd.f32 %v5349_v27, %v7057_v47  ;;  %v3037_v59 = vpop.f32.mrb[9].mxu0  ;;  %5398 = vmatmul.mubr.msk.f32.gmra.mrb[36].mxu1 %vm3270_vm4, %v3232_v46  ;;  %v3234_v37 = vmax.f32 %v3202_v15, 0.0 }
 0x222   : > { %v3233_v3 = vmax.f32 %v3201_v45, 0.0  ;;  %v5554_v26 = vadd.f32 %v3037_v59, %v7059_v19 }
 0x223   : > { %v3204_v31 = vadd.f32 %v5553_v35, %v7120_v1 }
 0x224   : > { %v3203_v22 = vadd.f32 %v5554_v26, %v7120_v1  ;;  %v5352_v16 = vpop.f32.mrb[10].mxu0  ;;  %5400 = vmatprep.mubr.msk.f32.mxu1 %vm3270_vm4, %v3233_v3 }
 0x225   : > { %v5555_v29 = vadd.f32 %v5352_v16, %v7061_v57  ;;  %v3047_v41 = vpop.f32.mrb[11].mxu0  ;;  %5401 = vmatmul.mubr.msk.f32.gmra.mrb[38].mxu1 %vm3270_vm4, %v3234_v37  ;;  %v3236_v10 = vmax.f32 %v3204_v31, 0.0 }
 0x226   : > { %v3235_v47 = vmax.f32 %v3203_v22, 0.0  ;;  %v5556_v0 = vadd.f32 %v3047_v41, %v7063_v21 }
 0x227   : > { %v3206_v20 = vadd.f32 %v5555_v29, %v7120_v1 }
 0x228   : > { %v3205_v19 = vadd.f32 %v5556_v0, %v7120_v1  ;;  %v5355_v24 = vpop.f32.mrb[12].mxu0  ;;  %5403 = vmatprep.mubr.msk.f32.mxu1 %vm3270_vm4, %v3235_v47 }
 0x229   : > { %v5557_v11 = vadd.f32 %v5355_v24, %v7065_v51  ;;  %v3057_v28 = vpop.f32.mrb[13].mxu0  ;;  %5404 = vmatmul.mubr.msk.f32.gmra.mrb[40].mxu1 %vm3270_vm4, %v3236_v10  ;;  %v3238_v48 = vmax.f32 %v3206_v20, 0.0 }
 0x22a   : > { %v3237_v57 = vmax.f32 %v3205_v19, 0.0  ;;  %v5558_v34 = vadd.f32 %v3057_v28, %v7067_v8 }
 0x22b   : > { %v3208_v50 = vadd.f32 %v5557_v11, %v7120_v1 }
 0x22c   : > { %v3207_v21 = vadd.f32 %v5558_v34, %v7120_v1  ;;  %v5358_v56 = vpop.f32.mrb[14].mxu0  ;;  %5406 = vmatprep.mubr.msk.f32.mxu1 %vm3270_vm4, %v3237_v57 }
 0x22d   : > { %v5559_v61 = vadd.f32 %v5358_v56, %v7069_v52  ;;  %v3067_v6 = vpop.f32.mrb[15].mxu0  ;;  %5407 = vmatmul.mubr.msk.f32.gmra.mrb[42].mxu1 %vm3270_vm4, %v3238_v48  ;;  %v3240_v14 = vmax.f32 %v3208_v50, 0.0 }
 0x22e   : > { %v3239_v51 = vmax.f32 %v3207_v21, 0.0  ;;  %v5560_v32 = vadd.f32 %v3067_v6, %v7071_v54 }
 0x22f   : > { %v3210_v44 = vadd.f32 %v5559_v61, %v7120_v1 }
 0x230   : > { %v3209_v8 = vadd.f32 %v5560_v32, %v7120_v1  ;;  %v5361_v53 = vpop.f32.mrb[16].mxu0  ;;  %5409 = vmatprep.mubr.msk.f32.mxu1 %vm3270_vm4, %v3239_v51 }
 0x231   : > { %v5561_v7 = vadd.f32 %v5361_v53, %v7079_v63  ;;  %v3077_v12 = vpop.f32.mrb[17].mxu0  ;;  %5410 = vmatmul.mubr.msk.f32.gmra.mrb[44].mxu1 %vm3270_vm4, %v3240_v14  ;;  %v3242_v38 = vmax.f32 %v3210_v44, 0.0 }
 0x232   : > { %v3241_v52 = vmax.f32 %v3209_v8, 0.0  ;;  %v5562_v39 = vadd.f32 %v3077_v12, %v7081_v33 }
 0x233   : > { %v3212_v40 = vadd.f32 %v5561_v7, %v7120_v1 }
 0x234   : > { %v3211_v54 = vadd.f32 %v5562_v39, %v7120_v1  ;;  %v5364_v60 = vpop.f32.mrb[18].mxu0  ;;  %5412 = vmatprep.mubr.msk.f32.mxu1 %vm3270_vm4, %v3241_v52 }
 0x235   : > { %v5563_v18 = vadd.f32 %v5364_v60, %v7089_v17  ;;  %v3087_v2 = vpop.f32.mrb[19].mxu0  ;;  %5413 = vmatmul.mubr.msk.f32.gmra.mrb[46].mxu1 %vm3270_vm4, %v3242_v38  ;;  %v3244_v46 = vmax.f32 %v3212_v40, 0.0 }
 0x236   : > { %v3243_v63 = vmax.f32 %v3211_v54, 0.0  ;;  %v5564_v5 = vadd.f32 %v3087_v2, %v7091_v9 }
 0x237   : > { %v3214_v15 = vadd.f32 %v5563_v18, %v7120_v1 }
 0x238   : > { %v3213_v33 = vadd.f32 %v5564_v5, %v7120_v1  ;;  %v5367_v45 = vpop.f32.mrb[20].mxu0  ;;  %5415 = vmatprep.mubr.msk.f32.mxu1 %vm3270_vm4, %v3243_v63 }
 0x239   : > { %v5565_v27 = vadd.f32 %v5367_v45, %v7093_v25  ;;  %v3097_v35 = vpop.f32.mrb[21].mxu0  ;;  %5416 = vmatmul.mubr.msk.f32.gmra.mrb[48].mxu1 %vm3270_vm4, %v3244_v46  ;;  %v3246_v3 = vmax.f32 %v3214_v15, 0.0 }
 0x23a   : > { %v3245_v17 = vmax.f32 %v3213_v33, 0.0  ;;  %v5566_v59 = vadd.f32 %v3097_v35, %v7095_v30 }
 0x23b   : > { %v3216_v26 = vadd.f32 %v5565_v27, %v7120_v1 }
 0x23c   : > { %v3215_v9 = vadd.f32 %v5566_v59, %v7120_v1  ;;  %v5370_v37 = vpop.f32.mrb[22].mxu0  ;;  %5418 = vmatprep.mubr.msk.f32.mxu1 %vm3270_vm4, %v3245_v17 }
 0x23d   : > { %v5567_v31 = vadd.f32 %v5370_v37, %v7097_v43  ;;  %v3107_v22 = vpop.f32.mrb[23].mxu0  ;;  %5419 = vmatmul.mubr.msk.f32.gmra.mrb[50].mxu1 %vm3270_vm4, %v3246_v3  ;;  %v3248_v29 = vmax.f32 %v3216_v26, 0.0 }
 0x23e   : > { %v3247_v25 = vmax.f32 %v3215_v9, 0.0  ;;  %v5568_v16 = vadd.f32 %v3107_v22, %v7099_v23 }
 0x23f   : > { %v3218_v41 = vadd.f32 %v5567_v31, %v7120_v1 }
 0x240   : > { %v3217_v30 = vadd.f32 %v5568_v16, %v7120_v1  ;;  %v5373_v47 = vpop.f32.mrb[24].mxu0  ;;  %5421 = vmatprep.mubr.msk.f32.mxu1 %vm3270_vm4, %v3247_v25 }
 0x241   : > { %v5569_v0 = vadd.f32 %v5373_v47, %v7101_v62  ;;  %v3117_v10 = vpop.f32.mrb[25].mxu0  ;;  %5422 = vmatmul.mubr.msk.f32.gmra.mrb[52].mxu1 %vm3270_vm4, %v3248_v29  ;;  %v3250_v19 = vmax.f32 %v3218_v41, 0.0 }
 0x242   : > { %v3249_v43 = vmax.f32 %v3217_v30, 0.0  ;;  %v5570_v20 = vadd.f32 %v3117_v10, %v7103_v55 }
 0x243   : > { %v3220_v24 = vadd.f32 %v5569_v0, %v7120_v1 }
 0x244   : > { %v3219_v23 = vadd.f32 %v5570_v20, %v7120_v1  ;;  %v5376_v11 = vpop.f32.mrb[26].mxu0  ;;  %5424 = vmatprep.mubr.msk.f32.mxu1 %vm3270_vm4, %v3249_v43 }
 0x245   : > { %v5571_v28 = vadd.f32 %v5376_v11, %v7105_v42  ;;  %v3127_v57 = vpop.f32.mrb[27].mxu0  ;;  %5425 = vmatmul.mubr.msk.f32.gmra.mrb[54].mxu1 %vm3270_vm4, %v3250_v19  ;;  %v3252_v48 = vmax.f32 %v3220_v24, 0.0 }
 0x246   : > { %v3251_v62 = vmax.f32 %v3219_v23, 0.0  ;;  %v5572_v34 = vadd.f32 %v3127_v57, %v7107_v36 }
 0x247   : > { %v3222_v50 = vadd.f32 %v5571_v28, %v7120_v1 }
 0x248   : > { %v3221_v55 = vadd.f32 %v5572_v34, %v7120_v1  ;;  %v5379_v21 = vpop.f32.mrb[28].mxu0  ;;  %5427 = vmatprep.mubr.msk.f32.mxu1 %vm3270_vm4, %v3251_v62 }
 0x249   : > { %v5573_v56 = vadd.f32 %v5379_v21, %v7109_v49  ;;  %v3137_v61 = vpop.f32.mrb[29].mxu0  ;;  %5428 = vmatmul.mubr.msk.f32.gmra.mrb[56].mxu1 %vm3270_vm4, %v3252_v48  ;;  %v3254_v51 = vmax.f32 %v3222_v50, 0.0 }
 0x24a   : > { %v3253_v42 = vmax.f32 %v3221_v55, 0.0  ;;  %v5574_v6 = vadd.f32 %v3137_v61, %v7111_v58 }
 0x24b   : > { %v3224_v32 = vadd.f32 %v5573_v56, %v7120_v1 }
 0x24c   : > { %v3223_v36 = vadd.f32 %v5574_v6, %v7120_v1  ;;  %v5382_v14 = vpop.f32.mrb[30].mxu0  ;;  %5430 = vmatprep.mubr.msk.f32.mxu1 %vm3270_vm4, %v3253_v42 }
 0x24d   : > { %v5575_v44 = vadd.f32 %v5382_v14, %v7113_v4  ;;  %v3147_v8 = vpop.f32.mrb[31].mxu0  ;;  %5431 = vmatmul.mubr.msk.f32.gmra.mrb[58].mxu1 %vm3270_vm4, %v3254_v51  ;;  %v3256_v7 = vmax.f32 %v3224_v32, 0.0  ;;  %v3755_v4 = vld [vmem:[%s7368_s5 + $0x8] sm:$0xff] }
 0x24e   : > { %v3255_v49 = vmax.f32 %v3223_v36, 0.0  ;;  %v5576_v53 = vadd.f32 %v3147_v8, %v7115_v13  ;;  %v7218_v13 = vld [vmem:[%s7367_s4] ss:$0 sm:$0xff] }
 0x24f   : > { %v3226_v12 = vadd.f32 %v5575_v44, %v7120_v1 }
 0x250   : > { %v3225_v58 = vadd.f32 %v5576_v53, %v7120_v1  ;;  %5433 = vmatprep.mubr.msk.f32.mxu1 %vm3270_vm4, %v3255_v49 }
 0x251   : > { %5434 = vmatmul.mubr.msk.f32.gmra.mrb[60].mxu1 %vm3270_vm4, %v3256_v7  ;;  %v3258_v39 = vmax.f32 %v3226_v12, 0.0 }
 0x252   : > { %v3257_v52 = vmax.f32 %v3225_v58, 0.0 }
 0x254   : > { %5436 = vmatprep.mubr.msk.f32.mxu1 %vm3270_vm4, %v3257_v52 }
 0x255   : > { %5437 = vmatmul.mubr.msk.f32.gmra.mrb[62].mxu1 %vm3270_vm4, %v3258_v39 }
 0x256   : > { %3822 = vmatprep.mubr.f32.mxu1 %v3755_v4 }
 0x2ec   : > { %v5393_v1 = vpop.f32.mrb[32].mxu1 }
 0x2ed   : > { %v3439_v38 = vadd.f32 %v5393_v1, %v7218_v13  ;;  %v3433_v40 = vpop.f32.mrb[33].mxu1 }
 0x2ee   : > { %v3434_v54 = vadd.f32 %v7218_v13, %v3433_v40 }
 0x2ef   : > { %5812 = vtanh.f32 %v3439_v38 }
 0x2f0   : > { %5814 = vtanh.f32 %v3434_v54  ;;  %v5396_v60 = vpop.f32.mrb[34].mxu1 }
 0x2f1   : > { %v3449_v18 = vadd.f32 %v5396_v60, %v7218_v13  ;;  %v3443_v2 = vpop.f32.mrb[35].mxu1 }
 0x2f2   : > { %v3444_v63 = vadd.f32 %v7218_v13, %v3443_v2 }
 0x2f3   : > { %5816 = vtanh.f32 %v3449_v18 }
 0x2f4   : > { %5818 = vtanh.f32 %v3444_v63  ;;  %v5399_v5 = vpop.f32.mrb[36].mxu1 }
 0x2f5   : > { %v3459_v46 = vadd.f32 %v5399_v5, %v7218_v13  ;;  %v3453_v15 = vpop.f32.mrb[37].mxu1 }
 0x2f6   : > { %v3454_v33 = vadd.f32 %v7218_v13, %v3453_v15 }
 0x2f7   : > { %5820 = vtanh.f32 %v3459_v46 }
 0x2f8   : > { %5822 = vtanh.f32 %v3454_v33  ;;  %v5402_v45 = vpop.f32.mrb[38].mxu1 }
 0x2f9   : > { %v5813_v27 = vpop.eup %5812  ;;  %v3469_v35 = vadd.f32 %v5402_v45, %v7218_v13  ;;  %v3463_v17 = vpop.f32.mrb[39].mxu1 }
 0x2fa   : > { %v5815_v59 = vpop.eup %5814  ;;  %v3625_v3 = vmul.f32 0.5, %v5813_v27  ;;  %v3464_v26 = vadd.f32 %v7218_v13, %v3463_v17 }
 0x2fb   : > { %v3624_v9 = vmul.f32 0.5, %v5815_v59  ;;  %5824 = vtanh.f32 %v3469_v35 }
 0x2fc   : > { %v3657_v37 = vadd.f32 0.5, %v3625_v3  ;;  %5826 = vtanh.f32 %v3464_v26  ;;  %v5405_v31 = vpop.f32.mrb[40].mxu1 }
 0x2fd   : > { %v5817_v22 = vpop.eup %5816  ;;  %v3656_v25 = vadd.f32 0.5, %v3624_v9  ;;  %v3479_v16 = vadd.f32 %v5405_v31, %v7218_v13  ;;  %v3473_v29 = vpop.f32.mrb[41].mxu1 }
 0x2fe   : > { %v5819_v41 = vpop.eup %5818  ;;  %v3689_v30 = vmax.f32 %v3657_v37, 0.0  ;;  %v3627_v47 = vmul.f32 0.5, %v5817_v22  ;;  %v3474_v0 = vadd.f32 %v7218_v13, %v3473_v29 }
 0x2ff   : > { %v3688_v10 = vmax.f32 %v3656_v25, 0.0  ;;  %v3626_v43 = vmul.f32 0.5, %v5819_v41  ;;  %5828 = vtanh.f32 %v3479_v16 }
 0x300   : > { %v3721_v20 = vmin.f32 %v3689_v30, 1.0  ;;  %v3659_v19 = vadd.f32 0.5, %v3627_v47  ;;  %5830 = vtanh.f32 %v3474_v0  ;;  %v5408_v24 = vpop.f32.mrb[42].mxu1 }
 0x301   : > { %v5821_v23 = vpop.eup %5820  ;;  %v3720_v11 = vmin.f32 %v3688_v10, 1.0  ;;  %v3658_v28 = vadd.f32 0.5, %v3626_v43  ;;  %v3489_v57 = vadd.f32 %v5408_v24, %v7218_v13  ;;  %v3483_v62 = vpop.f32.mrb[43].mxu1 }
 0x302   : > { %v5823_v34 = vpop.eup %5822  ;;  %v3691_v48 = vmax.f32 %v3659_v19, 0.0  ;;  %v3629_v50 = vmul.f32 0.5, %v5821_v23  ;;  %v3484_v55 = vadd.f32 %v7218_v13, %v3483_v62 }
 0x303   : > { %v7232_v21 = vpack.c.bf16 %v3721_v20, %v3720_v11  ;;  %v3690_v56 = vmax.f32 %v3658_v28, 0.0  ;;  %v3628_v61 = vmul.f32 0.5, %v5823_v34  ;;  %5832 = vtanh.f32 %v3489_v57 }
 0x304   : > { %v3723_v42 = vmin.f32 %v3691_v48, 1.0  ;;  %v3661_v6 = vadd.f32 0.5, %v3629_v50  ;;  %5834 = vtanh.f32 %v3484_v55  ;;  %v5411_v51 = vpop.f32.mrb[44].mxu1 }
 0x305   : > { %v5825_v32 = vpop.eup %5824  ;;  %v3722_v36 = vmin.f32 %v3690_v56, 1.0  ;;  %v3660_v14 = vadd.f32 0.5, %v3628_v61  ;;  %v3499_v44 = vadd.f32 %v5411_v51, %v7218_v13  ;;  %v3493_v8 = vpop.f32.mrb[45].mxu1 }
 0x306   : > { %v5827_v49 = vpop.eup %5826  ;;  %v3693_v53 = vmax.f32 %v3661_v6, 0.0  ;;  %v3631_v7 = vmul.f32 0.5, %v5825_v32  ;;  %v3494_v12 = vadd.f32 %v7218_v13, %v3493_v8 }
 0x307   : > { %v7236_v58 = vpack.c.bf16 %v3723_v42, %v3722_v36  ;;  %v3692_v52 = vmax.f32 %v3660_v14, 0.0  ;;  %v3630_v39 = vmul.f32 0.5, %v5827_v49  ;;  %5836 = vtanh.f32 %v3499_v44 }
 0x308   : > { %v3725_v4 = vmin.f32 %v3693_v53, 1.0  ;;  %v3663_v1 = vadd.f32 0.5, %v3631_v7  ;;  %5838 = vtanh.f32 %v3494_v12  ;;  %v5414_v38 = vpop.f32.mrb[46].mxu1 }
 0x309   : > { %v5829_v40 = vpop.eup %5828  ;;  %v3724_v54 = vmin.f32 %v3692_v52, 1.0  ;;  %v3662_v60 = vadd.f32 0.5, %v3630_v39  ;;  %v3509_v18 = vadd.f32 %v5414_v38, %v7218_v13  ;;  %v3503_v2 = vpop.f32.mrb[47].mxu1 }
 0x30a   : > { %v5831_v63 = vpop.eup %5830  ;;  %v3695_v5 = vmax.f32 %v3663_v1, 0.0  ;;  %v3633_v46 = vmul.f32 0.5, %v5829_v40  ;;  %v3504_v15 = vadd.f32 %v7218_v13, %v3503_v2 }
 0x30b   : > { %v7240_v33 = vpack.c.bf16 %v3725_v4, %v3724_v54  ;;  %v3694_v45 = vmax.f32 %v3662_v60, 0.0  ;;  %v3632_v27 = vmul.f32 0.5, %v5831_v63  ;;  %5840 = vtanh.f32 %v3509_v18 }
 0x30c   : > { %v3727_v35 = vmin.f32 %v3695_v5, 1.0  ;;  %v3665_v17 = vadd.f32 0.5, %v3633_v46  ;;  %5842 = vtanh.f32 %v3504_v15  ;;  %v5417_v59 = vpop.f32.mrb[48].mxu1 }
 0x30d   : > { %v5833_v3 = vpop.eup %5832  ;;  %v3726_v26 = vmin.f32 %v3694_v45, 1.0  ;;  %v3664_v9 = vadd.f32 0.5, %v3632_v27  ;;  %v3519_v37 = vadd.f32 %v5417_v59, %v7218_v13  ;;  %v3513_v31 = vpop.f32.mrb[49].mxu1 }
 0x30e   : > { %v5835_v22 = vpop.eup %5834  ;;  %v3697_v25 = vmax.f32 %v3665_v17, 0.0  ;;  %v3635_v16 = vmul.f32 0.5, %v5833_v3  ;;  %v3514_v29 = vadd.f32 %v7218_v13, %v3513_v31 }
 0x30f   : > { %v7244_v41 = vpack.c.bf16 %v3727_v35, %v3726_v26  ;;  %v3696_v30 = vmax.f32 %v3664_v9, 0.0  ;;  %v3634_v47 = vmul.f32 0.5, %v5835_v22  ;;  %5844 = vtanh.f32 %v3519_v37 }
 0x310   : > { %v3729_v0 = vmin.f32 %v3697_v25, 1.0  ;;  %v3667_v10 = vadd.f32 0.5, %v3635_v16  ;;  %5846 = vtanh.f32 %v3514_v29  ;;  %v5420_v43 = vpop.f32.mrb[50].mxu1 }
 0x311   : > { %v5837_v20 = vpop.eup %5836  ;;  %v3728_v19 = vmin.f32 %v3696_v30, 1.0  ;;  %v3666_v24 = vadd.f32 0.5, %v3634_v47  ;;  %v3529_v23 = vadd.f32 %v5420_v43, %v7218_v13  ;;  %v3523_v11 = vpop.f32.mrb[51].mxu1 }
 0x312   : > { %v5839_v28 = vpop.eup %5838  ;;  %v3699_v57 = vmax.f32 %v3667_v10, 0.0  ;;  %v3637_v62 = vmul.f32 0.5, %v5837_v20  ;;  %v3524_v34 = vadd.f32 %v7218_v13, %v3523_v11 }
 0x313   : > { %v7248_v48 = vpack.c.bf16 %v3729_v0, %v3728_v19  ;;  %v3698_v50 = vmax.f32 %v3666_v24, 0.0  ;;  %v3636_v55 = vmul.f32 0.5, %v5839_v28  ;;  %5848 = vtanh.f32 %v3529_v23 }
 0x314   : > { %v3731_v56 = vmin.f32 %v3699_v57, 1.0  ;;  %v3669_v61 = vadd.f32 0.5, %v3637_v62  ;;  %5850 = vtanh.f32 %v3524_v34  ;;  %v5423_v42 = vpop.f32.mrb[52].mxu1 }
 0x315   : > { %v5841_v6 = vpop.eup %5840  ;;  %v3730_v51 = vmin.f32 %v3698_v50, 1.0  ;;  %v3668_v32 = vadd.f32 0.5, %v3636_v55  ;;  %v3539_v36 = vadd.f32 %v5423_v42, %v7218_v13  ;;  %v3533_v14 = vpop.f32.mrb[53].mxu1 }
 0x316   : > { %v5843_v44 = vpop.eup %5842  ;;  %v3701_v8 = vmax.f32 %v3669_v61, 0.0  ;;  %v3639_v49 = vmul.f32 0.5, %v5841_v6  ;;  %v3534_v53 = vadd.f32 %v7218_v13, %v3533_v14 }
 0x317   : > { %v7252_v7 = vpack.c.bf16 %v3731_v56, %v3730_v51  ;;  %v3700_v12 = vmax.f32 %v3668_v32, 0.0  ;;  %v3638_v52 = vmul.f32 0.5, %v5843_v44  ;;  %5852 = vtanh.f32 %v3539_v36 }
 0x318   : > { %v3733_v39 = vmin.f32 %v3701_v8, 1.0  ;;  %v3671_v4 = vadd.f32 0.5, %v3639_v49  ;;  %5854 = vtanh.f32 %v3534_v53  ;;  %v5426_v1 = vpop.f32.mrb[54].mxu1 }
 0x319   : > { %v5845_v38 = vpop.eup %5844  ;;  %v3732_v40 = vmin.f32 %v3700_v12, 1.0  ;;  %v3670_v54 = vadd.f32 0.5, %v3638_v52  ;;  %v3549_v60 = vadd.f32 %v5426_v1, %v7218_v13  ;;  %v3543_v18 = vpop.f32.mrb[55].mxu1 }
 0x31a   : > { %v5847_v2 = vpop.eup %5846  ;;  %v3703_v63 = vmax.f32 %v3671_v4, 0.0  ;;  %v3641_v5 = vmul.f32 0.5, %v5845_v38  ;;  %v3544_v46 = vadd.f32 %v7218_v13, %v3543_v18 }
 0x31b   : > { %v7256_v15 = vpack.c.bf16 %v3733_v39, %v3732_v40  ;;  %v3702_v45 = vmax.f32 %v3670_v54, 0.0  ;;  %v3640_v27 = vmul.f32 0.5, %v5847_v2  ;;  %5856 = vtanh.f32 %v3549_v60 }
 0x31c   : > { %v3735_v35 = vmin.f32 %v3703_v63, 1.0  ;;  %v3673_v17 = vadd.f32 0.5, %v3641_v5  ;;  %5858 = vtanh.f32 %v3544_v46  ;;  %v5429_v59 = vpop.f32.mrb[56].mxu1 }
 0x31d   : > { %v5849_v3 = vpop.eup %5848  ;;  %v3734_v26 = vmin.f32 %v3702_v45, 1.0  ;;  %v3672_v9 = vadd.f32 0.5, %v3640_v27  ;;  %v3559_v37 = vadd.f32 %v5429_v59, %v7218_v13  ;;  %v3553_v31 = vpop.f32.mrb[57].mxu1 }
 0x31e   : > { %v5851_v22 = vpop.eup %5850  ;;  %v3705_v25 = vmax.f32 %v3673_v17, 0.0  ;;  %v3643_v16 = vmul.f32 0.5, %v5849_v3  ;;  %v3554_v29 = vadd.f32 %v7218_v13, %v3553_v31 }
 0x31f   : > { %v7260_v30 = vpack.c.bf16 %v3735_v35, %v3734_v26  ;;  %v3704_v47 = vmax.f32 %v3672_v9, 0.0  ;;  %v3642_v0 = vmul.f32 0.5, %v5851_v22  ;;  %5860 = vtanh.f32 %v3559_v37 }
 0x320   : > { %v3737_v10 = vmin.f32 %v3705_v25, 1.0  ;;  %v3675_v43 = vadd.f32 0.5, %v3643_v16  ;;  %5862 = vtanh.f32 %v3554_v29  ;;  %v5432_v20 = vpop.f32.mrb[58].mxu1 }
 0x321   : > { %v5853_v19 = vpop.eup %5852  ;;  %v3736_v24 = vmin.f32 %v3704_v47, 1.0  ;;  %v3674_v23 = vadd.f32 0.5, %v3642_v0  ;;  %v3569_v11 = vadd.f32 %v5432_v20, %v7218_v13  ;;  %v3563_v28 = vpop.f32.mrb[59].mxu1 }
 0x322   : > { %v5855_v57 = vpop.eup %5854  ;;  %v3707_v62 = vmax.f32 %v3675_v43, 0.0  ;;  %v3645_v34 = vmul.f32 0.5, %v5853_v19  ;;  %v3564_v50 = vadd.f32 %v7218_v13, %v3563_v28 }
 0x323   : > { %v3706_v55 = vmax.f32 %v3674_v23, 0.0  ;;  %v3644_v56 = vmul.f32 0.5, %v5855_v57  ;;  %5864 = vtanh.f32 %v3569_v11  ;;  %v7264_v61 = vpack.c.bf16 %v3737_v10, %v3736_v24 }
 0x324   : > { %v3739_v42 = vmin.f32 %v3707_v62, 1.0  ;;  %v3677_v6 = vadd.f32 0.5, %v3645_v34  ;;  %5866 = vtanh.f32 %v3564_v50  ;;  %v5435_v51 = vpop.f32.mrb[60].mxu1 }
 0x325   : > { %v5857_v32 = vpop.eup %5856  ;;  %v3738_v36 = vmin.f32 %v3706_v55, 1.0  ;;  %v3676_v14 = vadd.f32 0.5, %v3644_v56  ;;  %v3579_v44 = vadd.f32 %v5435_v51, %v7218_v13  ;;  %v3573_v8 = vpop.f32.mrb[61].mxu1  ;;  %5448 = vmatprep.subr.bf16.mxu1 %v7264_v61 }
 0x326   : > { %v5859_v49 = vpop.eup %5858  ;;  %v3709_v53 = vmax.f32 %v3677_v6, 0.0  ;;  %v3647_v12 = vmul.f32 0.5, %v5857_v32  ;;  %v3574_v52 = vadd.f32 %v7218_v13, %v3573_v8  ;;  %5450 = vmatpush3.bf16.msra.mxu1 %v7232_v21 }
 0x327   : > { %v3708_v39 = vmax.f32 %v3676_v14, 0.0  ;;  %v3646_v4 = vmul.f32 0.5, %v5859_v49  ;;  %5868 = vtanh.f32 %v3579_v44  ;;  %v7270_v1 = vpack.c.bf16 %v3739_v42, %v3738_v36 }
 0x328   : > { %v3741_v38 = vmin.f32 %v3709_v53, 1.0  ;;  %v3679_v40 = vadd.f32 0.5, %v3647_v12  ;;  %5870 = vtanh.f32 %v3574_v52  ;;  %v5438_v54 = vpop.f32.mrb[62].mxu1 }
 0x329   : > { %v5861_v60 = vpop.eup %5860  ;;  %v3740_v18 = vmin.f32 %v3708_v39, 1.0  ;;  %v3678_v2 = vadd.f32 0.5, %v3646_v4  ;;  %v3589_v63 = vadd.f32 %v5438_v54, %v7218_v13  ;;  %v3583_v5 = vpop.f32.mrb[63].mxu1  ;;  %5452 = vmatprep.subr.bf16.mxu1 %v7270_v1 }
 0x32a   : > { %v5863_v46 = vpop.eup %5862  ;;  %v3711_v45 = vmax.f32 %v3679_v40, 0.0  ;;  %v3649_v27 = vmul.f32 0.5, %v5861_v60  ;;  %v3584_v35 = vadd.f32 %v7218_v13, %v3583_v5  ;;  %5454 = vmatpush3.bf16.msra.mxu1 %v7236_v58  ;;  %v4476_v5 = vld [vmem:[%s7368_s5 + $0x28] sm:$0xff] }
 0x32b   : > { %v3710_v17 = vmax.f32 %v3678_v2, 0.0  ;;  %v3648_v59 = vmul.f32 0.5, %v5863_v46  ;;  %5872 = vtanh.f32 %v3589_v63  ;;  %v7276_v3 = vpack.c.bf16 %v3741_v38, %v3740_v18  ;;  %v3754_v18 = vld [vmem:[%s7368_s5] sm:$0xff]  ;;  %v3757_v2 = vld [vmem:[%s7368_s5 + $0x18] sm:$0x3] }
 0x32c   : > { %v3743_v26 = vmin.f32 %v3711_v45, 1.0  ;;  %v3681_v9 = vadd.f32 0.5, %v3649_v27  ;;  %5874 = vtanh.f32 %v3584_v35  ;;  %v3756_v63 = vld [vmem:[%s7368_s5 + $0x10] sm:$0x3]  ;;  %v4475_v46 = vld [vmem:[%s7368_s5 + $0x20] sm:$0xff]  ;;  %v4480_v35 = vld [vmem:[%s7368_s5 + $0x48] sm:$0xff] }
 0x32d   : > { %v5865_v37 = vpop.eup %5864  ;;  %v3742_v31 = vmin.f32 %v3710_v17, 1.0  ;;  %v3680_v22 = vadd.f32 0.5, %v3648_v59  ;;  %5456 = vmatprep.subr.bf16.mxu1 %v7276_v3  ;;  %v4478_v45 = vld [vmem:[%s7368_s5 + $0x38] sm:$0x3]  ;;  %v4477_v27 = vld [vmem:[%s7368_s5 + $0x30] sm:$0x3] }
 0x32e   : > { %v5867_v25 = vpop.eup %5866  ;;  %v3713_v16 = vmax.f32 %v3681_v9, 0.0  ;;  %v3651_v29 = vmul.f32 0.5, %v5865_v37  ;;  %5458 = vmatpush3.bf16.msra.mxu1 %v7240_v33 }
 0x32f   : > { %v3712_v13 = vmax.f32 %v3680_v22, 0.0  ;;  %v3650_v47 = vmul.f32 0.5, %v5867_v25  ;;  %v7280_v0 = vpack.c.bf16 %v3743_v26, %v3742_v31 }
 0x330   : > { %v3745_v10 = vmin.f32 %v3713_v16, 1.0  ;;  %v3683_v43 = vadd.f32 0.5, %v3651_v29 }
 0x331   : > { %v5869_v20 = vpop.eup %5868  ;;  %v3744_v19 = vmin.f32 %v3712_v13, 1.0  ;;  %v3682_v24 = vadd.f32 0.5, %v3650_v47  ;;  %5460 = vmatprep.subr.bf16.mxu1 %v7280_v0  ;;  %v3752_v13 = vld [vmem:[%s7369_s6] sm:$0xff] }
 0x332   : > { %v5871_v23 = vpop.eup %5870  ;;  %v3715_v11 = vmax.f32 %v3683_v43, 0.0  ;;  %v3653_v28 = vmul.f32 0.5, %v5869_v20  ;;  %5462 = vmatpush3.bf16.msra.mxu1 %v7244_v41 }
 0x333   : > { %v3714_v57 = vmax.f32 %v3682_v24, 0.0  ;;  %v3652_v62 = vmul.f32 0.5, %v5871_v23  ;;  %v7284_v34 = vpack.c.bf16 %v3745_v10, %v3744_v19  ;;  %v3753_v10 = vld [vmem:[%s7369_s6 + $0x8] sm:$0x3] }
 0x334   : > { %v3747_v50 = vmin.f32 %v3715_v11, 1.0  ;;  %v3685_v55 = vadd.f32 0.5, %v3653_v28 }
 0x335   : > { %v5873_v56 = vpop.eup %5872  ;;  %v3746_v42 = vmin.f32 %v3714_v57, 1.0  ;;  %v3684_v6 = vadd.f32 0.5, %v3652_v62  ;;  %5464 = vmatprep.subr.bf16.mxu1 %v7284_v34 }
 0x336   : > { %v5875_v51 = vpop.eup %5874  ;;  %v3717_v32 = vmax.f32 %v3685_v55, 0.0  ;;  %v3655_v36 = vmul.f32 0.5, %v5873_v56  ;;  %5466 = vmatpush3.bf16.msra.mxu1 %v7248_v48 }
 0x337   : > { %v3716_v14 = vmax.f32 %v3684_v6, 0.0  ;;  %v3654_v44 = vmul.f32 0.5, %v5875_v51  ;;  %v5467_v8 = vpack.c.bf16 %v3747_v50, %v3746_v42 }
 0x338   : > { %v3749_v49 = vmin.f32 %v3717_v32, 1.0  ;;  %v3687_v53 = vadd.f32 0.5, %v3655_v36 }
 0x339   : > { %v3748_v12 = vmin.f32 %v3716_v14, 1.0  ;;  %v3686_v52 = vadd.f32 0.5, %v3654_v44  ;;  %5468 = vmatprep.subr.bf16.mxu1 %v5467_v8 }
 0x33a   : > { %v3719_v39 = vmax.f32 %v3687_v53, 0.0  ;;  %5470 = vmatpush3.bf16.msra.mxu1 %v7252_v7 }
 0x33b   : > { %v3718_v4 = vmax.f32 %v3686_v52, 0.0  ;;  %v5471_v38 = vpack.c.bf16 %v3749_v49, %v3748_v12 }
 0x33c   : > { %v3751_v40 = vmin.f32 %v3719_v39, 1.0 }
 0x33d   : > { %v3750_v54 = vmin.f32 %v3718_v4, 1.0  ;;  %5472 = vmatprep.subr.bf16.mxu1 %v5471_v38 }
 0x33e   : > { %5474 = vmatpush3.bf16.msra.mxu1 %v7256_v15 }
 0x33f   : > { %v5475_v60 = vpack.c.bf16 %v3751_v40, %v3750_v54 }
 0x341   : > { %5476 = vmatprep.subr.bf16.mxu1 %v5475_v60 }
 0x342   : > { %5478 = vmatpush3.bf16.msra.mxu1 %v7260_v30 }
 0x343   : > { %5480 = vmatprep.subr.bf16.mxu1 %v7264_v61 }
 0x345   : > { %3823 = vmatmul.mubr.f32.vlgmr.msra.gmra.mrb[64].mxu1 %v3754_v18 }
 0x346   : > { %5482 = vmatpush3.bf16.msra.mxu1 %v7232_v21  ;;  %3827 = vmatprep.mubr.f32.mxu1 %v3757_v2 }
 0x347   : > { %5484 = vmatprep.subr.bf16.mxu1 %v7270_v1 }
 0x349   : > { %3828 = vmatmul.mubr.f32.gmra.mrb[66].mxu1 %v3756_v63 }
 0x34a   : > { %5486 = vmatpush3.bf16.msra.mxu1 %v7236_v58  ;;  %3904 = vmatprep.mubr.f32.mxu1 %v4476_v5 }
 0x34b   : > { %5488 = vmatprep.subr.bf16.mxu1 %v7276_v3 }
 0x34e   : > { %5490 = vmatpush3.bf16.msra.mxu1 %v7240_v33 }
 0x34f   : > { %5492 = vmatprep.subr.bf16.mxu1 %v7280_v0 }
 0x352   : > { %5494 = vmatpush3.bf16.msra.mxu1 %v7244_v41 }
 0x353   : > { %5496 = vmatprep.subr.bf16.mxu1 %v7284_v34 }
 0x356   : > { %5498 = vmatpush3.bf16.msra.mxu1 %v7248_v48 }
 0x357   : > { %5500 = vmatprep.subr.bf16.mxu1 %v5467_v8 }
 0x35a   : > { %5502 = vmatpush3.bf16.msra.mxu1 %v7252_v7 }
 0x35b   : > { %5504 = vmatprep.subr.bf16.mxu1 %v5471_v38 }
 0x35e   : > { %5506 = vmatpush3.bf16.msra.mxu1 %v7256_v15 }
 0x35f   : > { %5508 = vmatprep.subr.bf16.mxu1 %v5475_v60 }
 0x362   : > { %5510 = vmatpush3.bf16.msra.mxu1 %v7260_v30 }
 0x363   : > { %5512 = vmatprep.subr.bf16.mxu1 %v7264_v61 }
 0x365   : > { %3905 = vmatmul.mubr.f32.vlgmr.msra.gmra.mrb[68].mxu1 %v4475_v46 }
 0x366   : > { %5514 = vmatpush3.bf16.msra.mxu1 %v7232_v21  ;;  %3909 = vmatprep.mubr.f32.mxu1 %v4478_v45  ;;  %v4479_v21 = vld [vmem:[%s7368_s5 + $0x40] sm:$0xff] }
 0x367   : > { %5516 = vmatprep.subr.bf16.mxu1 %v7270_v1 }
 0x369   : > { %3910 = vmatmul.mubr.f32.gmra.mrb[70].mxu1 %v4477_v27 }
 0x36a   : > { %5518 = vmatpush3.bf16.msra.mxu1 %v7236_v58  ;;  %3994 = vmatprep.mubr.f32.mxu1 %v4480_v35  ;;  %v4482_v58 = vld [vmem:[%s7368_s5 + $0x58] sm:$0x3] }
 0x36b   : > { %5520 = vmatprep.subr.bf16.mxu1 %v7276_v3 }
 0x36e   : > { %5522 = vmatpush3.bf16.msra.mxu1 %v7240_v33  ;;  %v4481_v33 = vld [vmem:[%s7368_s5 + $0x50] sm:$0x3] }
 0x36f   : > { %5524 = vmatprep.subr.bf16.mxu1 %v7280_v0 }
 0x372   : > { %5526 = vmatpush3.bf16.msra.mxu1 %v7244_v41 }
 0x373   : > { %5528 = vmatprep.subr.bf16.mxu1 %v7284_v34 }
 0x376   : > { %5530 = vmatpush3.bf16.msra.mxu1 %v7248_v48 }
 0x377   : > { %5532 = vmatprep.subr.bf16.mxu1 %v5467_v8 }
 0x37a   : > { %5534 = vmatpush3.bf16.msra.mxu1 %v7252_v7 }
 0x37b   : > { %5536 = vmatprep.subr.bf16.mxu1 %v5471_v38 }
 0x37e   : > { %5538 = vmatpush3.bf16.msra.mxu1 %v7256_v15 }
 0x37f   : > { %5540 = vmatprep.subr.bf16.mxu1 %v5475_v60 }
 0x382   : > { %5542 = vmatpush3.bf16.msra.mxu1 %v7260_v30 }
 0x385   : > { %3995 = vmatmul.mubr.f32.vlgmr.msra.gmra.mrb[72].mxu1 %v4479_v21 }
 0x386   : > { %3999 = vmatprep.mubr.f32.mxu1 %v4482_v58 }
 0x389   : > { %4000 = vmatmul.mubr.f32.gmra.mrb[74].mxu1 %v4481_v33 }
 0x418   : > { %v4851_v41 = vpop.f32.mrb[64].mxu1 }
 0x419   : > { %v4852_v48 = vpop.f32.mrb[65].mxu1 }
 0x41a   : > { %v4853_v7 = vadd.f32 %v4852_v48, %v4851_v41 }
 0x41c   : > { %v4854_v15 = vpop.f32.mrb[66].mxu1  ;;  %v3833_v0 = vadd.f32 %v4853_v7, %v3752_v13 }
 0x41d   : > { %v4855_v30 = vpop.f32.mrb[67].mxu1 }
 0x41e   : > { %v4856_v61 = vadd.f32 %v4855_v30, %v4854_v15 }
 0x420   : > { %v3834_v24 = vadd.f32 %v4856_v61, %v3753_v10 }
 0x438   : > { %v4889_v1 = vpop.f32.mrb[68].mxu1 }
 0x439   : > { %v4890_v17 = vpop.f32.mrb[69].mxu1 }
 0x43a   : > { %v4891_v59 = vadd.f32 %v4890_v17, %v4889_v1 }
 0x43c   : > { %v4892_v3 = vpop.f32.mrb[70].mxu1  ;;  %3917 = vrot.lane.b32.xlu0 %v4891_v59, %s5884_s19 }
 0x43d   : > { %v4893_v26 = vpop.f32.mrb[71].mxu1 }
 0x43e   : > { %v4894_v9 = vadd.f32 %v4893_v26, %v4892_v3 }
 0x440   : > { %3919 = vrot.lane.b32.xlu0 %v4894_v9, %s5884_s19 }
 0x458   : > { %v4927_v37 = vpop.f32.mrb[72].mxu1 }
 0x459   : > { %v4928_v31 = vpop.f32.mrb[73].mxu1 }
 0x45a   : > { %v4929_v22 = vadd.f32 %v4928_v31, %v4927_v37 }
 0x45c   : > { %v4930_v25 = vpop.f32.mrb[74].mxu1  ;;  %4007 = vrot.lane.b32.xlu1 %v4929_v22, %s5885_s20 }
 0x45d   : > { %v4931_v16 = vpop.f32.mrb[75].mxu1 }
 0x45e   : > { %v4932_v29 = vadd.f32 %v4931_v16, %v4930_v25 }
 0x460   : > { %4009 = vrot.lane.b32.xlu1 %v4932_v29, %s5885_s20 }
 0x4ae   : > { %v3918_v47 = vpop.permute.xlu0 %3917 }
 0x4af   : > { %v3923_v43 = vadd.f32 %v3918_v47, %v3833_v0 }
 0x4b2   : > { %v3920_v20 = vpop.permute.xlu0 %3919 }
 0x4b3   : > { %v3924_v11 = vadd.f32 %v3920_v20, %v3834_v24 }
 0x4ce   : > { %v4008_v19 = vpop.permute.xlu1 %4007 }
 0x4cf   : > { %v4013_v23 = vadd.f32 %v4008_v19, %v3923_v43 }
 0x4d1   : > { %4016 = vst.msk [vmem:[%s278_s30] sm:$0xff] %vm4015_vm5, %v4013_v23 }
 0x4d2   : > { %v4010_v28 = vpop.permute.xlu1 %4009 }
 0x4d3   : > { %v4014_v57 = vadd.f32 %v4010_v28, %v3924_v11 }
 0x4d5   : > { %4018 = vst.msk [vmem:[%s278_s30 + $0x8] sm:$0x3] %vm4017_vm6, %v4014_v57 }
 0x4d6 PF: > { %s17_s24 = sadd.s32 1, %s5882_s24  }
 0x4d7   : > { %p14_p4 = scmp.ge.s32.totalorder %s17_s24, 4  }
 0x4d9   :  { %16 = sbr.rel (!%p14_p4) target bundleno = 1 (0x1), region = 88 }

</bundles_post_ra>
